<compile_context>
chip_gen: v7x
topology: tpu7x:2x2x1
jax: 0.10.0
libtpu: 0.0.40
codegen_flags: <defaults>
</compile_context>

<pallas_src>
import functools

import jax
import jax.numpy as jnp
from jax import lax
from jax.experimental import pallas as pl
from jax.experimental.pallas import tpu as pltpu


# ---------------------------------------------------------------------------
# Fused matmul kernel:  out = [relu](scale * (W @ X + add) + shift) + residual
# ---------------------------------------------------------------------------
def _fused_mm_kernel(*refs, relu, has_bn, has_add, has_res):
    it = iter(refs)
    w_ref = next(it)
    x_ref = next(it)
    scale_ref = next(it) if has_bn else None
    shift_ref = next(it) if has_bn else None
    add_ref = next(it) if has_add else None
    res_ref = next(it) if has_res else None
    o_ref = next(it)

    acc = jnp.dot(w_ref[...], x_ref[...], preferred_element_type=jnp.float32)
    if has_add:
        acc = acc + add_ref[...].astype(jnp.float32)
    if has_bn:
        acc = acc * scale_ref[...].astype(jnp.float32) \
              + shift_ref[...].astype(jnp.float32)
    if relu:
        acc = jnp.maximum(acc, 0.0)
    if has_res:
        acc = acc + res_ref[...].astype(jnp.float32)
    o_ref[...] = acc.astype(o_ref.dtype)


def _lane_tile(m, cap=2048):
    """Largest lane-aligned tile (multiple of 128) dividing m, capped; else m."""
    if m <= cap or m % 128 != 0:
        return m
    for t in range(cap, 127, -128):
        if m % t == 0:
            return t
    return m


def conv_mm(w2d, x2d, *, scale=None, shift=None, add=None, residual=None,
            relu=False):
    """out[Cout, M] = [relu](scale*(w2d @ x2d + add) + shift) + residual."""
    cout, k = w2d.shape
    k2, m = x2d.shape
    assert k == k2
    has_bn = scale is not None
    has_add = add is not None
    has_res = residual is not None

    tm = _lane_tile(m)
    grid = (m // tm,)

    in_arrays = [w2d, x2d]
    in_specs = [
        pl.BlockSpec((cout, k), lambda i: (0, 0)),
        pl.BlockSpec((k, tm), lambda i: (0, i)),
    ]
    if has_bn:
        in_arrays += [scale.reshape(cout, 1), shift.reshape(cout, 1)]
        in_specs += [pl.BlockSpec((cout, 1), lambda i: (0, 0)),
                     pl.BlockSpec((cout, 1), lambda i: (0, 0))]
    if has_add:
        in_arrays.append(add)
        in_specs.append(pl.BlockSpec((cout, tm), lambda i: (0, i)))
    if has_res:
        in_arrays.append(residual)
        in_specs.append(pl.BlockSpec((cout, tm), lambda i: (0, i)))

    kernel = functools.partial(_fused_mm_kernel, relu=relu, has_bn=has_bn,
                               has_add=has_add, has_res=has_res)
    return pl.pallas_call(
        kernel,
        out_shape=jax.ShapeDtypeStruct((cout, m), x2d.dtype),
        grid_spec=pltpu.PrefetchScalarGridSpec(
            num_scalar_prefetch=0,
            grid=grid,
            in_specs=in_specs,
            out_specs=pl.BlockSpec((cout, tm), lambda i: (0, i)),
        ),
        compiler_params=pltpu.CompilerParams(
            dimension_semantics=("parallel",)),
    )(*in_arrays)


# ---------------------------------------------------------------------------
# Conv plumbing (channels-major layout (C, N, H, W))
# ---------------------------------------------------------------------------
def _w2d(w_oihw):
    """PyTorch (O, I, KH, KW) -> (O, KH*KW*I), matching im2col tap order."""
    o, i, kh, kw = w_oihw.shape
    return jnp.transpose(w_oihw, (0, 2, 3, 1)).reshape(o, kh * kw * i)


def _im2col_reflect(x, ksize, dilation):
    """x: (C, N, H, W) -> patches (ksize*ksize*C, N*H*W); reflect pad=dilation."""
    c, n, h, w = x.shape
    p = dilation
    assert p <= h - 1 and p <= w - 1, "reflect padding requires pad <= dim-1"
    xp = jnp.pad(x, ((0, 0), (0, 0), (p, p), (p, p)), mode="reflect")
    taps = []
    for kh in range(ksize):
        for kw in range(ksize):
            taps.append(lax.slice(
                xp,
                (0, 0, kh * dilation, kw * dilation),
                (c, n, kh * dilation + h, kw * dilation + w)))
    pat = jnp.stack(taps, axis=0)                 # (KK, C, N, H, W)
    return pat.reshape(ksize * ksize * c, n * h * w)


def _bn_fold(bn):
    scale = bn["gamma"] / jnp.sqrt(bn["var"] + bn["eps"])
    shift = bn["beta"] - bn["mean"] * scale
    return scale, shift


# ---------------------------------------------------------------------------
# FFC sub-modules (Pallas matmuls + XLA FFT glue)
# ---------------------------------------------------------------------------
def _fourier_unit(x, p):
    """x: (C, N, H, W) -> (C, N, H, W)."""
    # TODO(synk): rfft2/irfft2 have no Pallas primitive; FFTs stay in XLA.
    c, n, h, w = x.shape
    f = jnp.fft.rfft2(x, norm="ortho")                        # (C, N, H, Wr)
    wr = f.shape[-1]
    ff = jnp.stack([f.real, f.imag], axis=1).reshape(2 * c, n * h * wr)
    sc, sh = _bn_fold(p["bn"])
    y = conv_mm(p["w"].reshape(2 * c, 2 * c), ff.astype(x.dtype),
                scale=sc, shift=sh, relu=True)                # (2C, N*H*Wr)
    y = y.reshape(c, 2, n, h, wr)
    yc = lax.complex(y[:, 0], y[:, 1])
    out = jnp.fft.irfft2(yc, s=(h, w), norm="ortho")
    return out.astype(x.dtype)


def _spectral_transform(xg, p):
    """xg: (Cg, N, H, W) -> (Cg_out, N*H*W). stride==1 (Identity downsample)."""
    cg, n, h, w = xg.shape
    m = n * h * w
    half = p["w1"].shape[0]
    sc1, sh1 = _bn_fold(p["bn1"])
    h1 = conv_mm(p["w1"].reshape(half, cg), xg.reshape(cg, m),
                 scale=sc1, shift=sh1, relu=True)             # (half, M)
    h1_4d = h1.reshape(half, n, h, w)
    fu = _fourier_unit(h1_4d, p["fu"])                        # (half, N, H, W)
    cout = p["w2"].shape[0]
    return conv_mm(p["w2"].reshape(cout, half),
                   (h1_4d + fu).reshape(half, m))             # (Cg_out, M)


def _rest_ffc_bn_act(xl, xg, p, dilation, res_l=None, res_g=None):
    """One REST_FFC_BN_ACT layer; optional post-activation residuals fused."""
    cl, n, h, w = xl.shape
    cg = xg.shape[0]
    m = n * h * w

    pat_l = _im2col_reflect(xl, 3, dilation)                  # (9*Cl, M)
    pat_g = _im2col_reflect(xg, 3, dilation)                  # (9*Cg, M)

    # local branch: relu(bn_l(convl2l(xl) + convg2l(xg))) [+ residual]
    w_l = jnp.concatenate([_w2d(p["w_l2l"]), _w2d(p["w_g2l"])], axis=1)
    pat_lg = jnp.concatenate([pat_l, pat_g], axis=0)
    sc_l, sh_l = _bn_fold(p["bn_l"])
    out_l = conv_mm(w_l, pat_lg, scale=sc_l, shift=sh_l, relu=True,
                    residual=None if res_l is None else res_l.reshape(-1, m))

    # global branch: relu(bn_g(convl2g(xl) + SpectralTransform(xg))) [+ residual]
    spec = _spectral_transform(xg, p["spec"])                 # (out_cg, M)
    sc_g, sh_g = _bn_fold(p["bn_g"])
    out_g = conv_mm(_w2d(p["w_l2g"]), pat_l, scale=sc_g, shift=sh_g, relu=True,
                    add=spec,
                    residual=None if res_g is None else res_g.reshape(-1, m))

    out_cl, out_cg = out_l.shape[0], out_g.shape[0]
    return out_l.reshape(out_cl, n, h, w), out_g.reshape(out_cg, n, h, w)


@functools.partial(jax.jit, static_argnames=("dilation",))
def ffc_resnet_block_forward(x_l, x_g, params, *, dilation=1):
    """x_l: (N, Cl, H, W), x_g: (N, Cg, H, W) in PyTorch NCHW."""
    # single cheap leading-dim swap to channels-major; lane axis stays N*H*W
    xl = jnp.transpose(x_l, (1, 0, 2, 3))
    xg = jnp.transpose(x_g, (1, 0, 2, 3))
    id_l, id_g = xl, xg
    xl, xg = _rest_ffc_bn_act(xl, xg, params["conv1"], dilation)
    xl, xg = _rest_ffc_bn_act(xl, xg, params["conv2"], dilation,
                              res_l=id_l, res_g=id_g)
    return jnp.transpose(xl, (1, 0, 2, 3)), jnp.transpose(xg, (1, 0, 2, 3))


# ---------------------------------------------------------------------------
# Parameters (eval-mode BatchNorm: folded running stats)
# TODO(synk): training-mode BatchNorm (batch statistics) not implemented.
# ---------------------------------------------------------------------------
def _init_bn(key, c):
    k = jax.random.split(key, 4)
    return dict(
        gamma=jax.random.uniform(k[0], (c,), jnp.float32, 0.5, 1.5),
        beta=0.1 * jax.random.normal(k[1], (c,), jnp.float32),
        mean=0.1 * jax.random.normal(k[2], (c,), jnp.float32),
        var=jax.random.uniform(k[3], (c,), jnp.float32, 0.5, 1.5),
        eps=1e-5,
    )


def _init_layer(key, dim, ratio):
    in_cg = int(dim * ratio); in_cl = dim - in_cg
    out_cg = int(dim * ratio); out_cl = dim - out_cg
    half = out_cg // 2
    k = jax.random.split(key, 10)
    w = lambda kk, shape: 0.1 * jax.random.normal(kk, shape, jnp.float32)
    return dict(
        w_l2l=w(k[0], (out_cl, in_cl, 3, 3)),
        w_l2g=w(k[1], (out_cg, in_cl, 3, 3)),
        w_g2l=w(k[2], (out_cl, in_cg, 3, 3)),
        bn_l=_init_bn(k[3], out_cl),
        bn_g=_init_bn(k[4], out_cg),
        spec=dict(
            w1=w(k[5], (half, in_cg, 1, 1)),
            bn1=_init_bn(k[6], half),
            fu=dict(w=w(k[7], (2 * half, 2 * half, 1, 1)),
                    bn=_init_bn(k[8], 2 * half)),
            w2=w(k[9], (out_cg, half, 1, 1)),
        ),
    )


def init_params(key, dim, ratio=0.75):
    k1, k2 = jax.random.split(key)
    return dict(conv1=_init_layer(k1, dim, ratio),
                conv2=_init_layer(k2, dim, ratio))


# ---------------------------------------------------------------------------
# Pure-JAX reference (mirrors the PyTorch module) for correctness checking
# ---------------------------------------------------------------------------
def _ref_conv_reflect(x, w, padding, dilation):
    xp = jnp.pad(x, ((0, 0), (0, 0), (padding, padding), (padding, padding)),
                 mode="reflect")
    return lax.conv_general_dilated(
        xp, w, window_strides=(1, 1), padding="VALID",
        rhs_dilation=(dilation, dilation),
        dimension_numbers=("NCHW", "OIHW", "NCHW"))


def _ref_conv1x1(x, w):
    return lax.conv_general_dilated(
        x, w, (1, 1), "VALID", dimension_numbers=("NCHW", "OIHW", "NCHW"))


def _ref_bn(x, bn):
    scale = bn["gamma"] / jnp.sqrt(bn["var"] + bn["eps"])
    shift = bn["beta"] - bn["mean"] * scale
    return x * scale[None, :, None, None] + shift[None, :, None, None]


def _ref_fourier_unit(x, p):
    n, c, h, w = x.shape
    f = jnp.fft.rfft2(x, norm="ortho")
    ff = jnp.stack([f.real, f.imag], axis=-1)
    ff = jnp.transpose(ff, (0, 1, 4, 2, 3)).reshape(n, 2 * c, h, -1)
    ff = jax.nn.relu(_ref_bn(_ref_conv1x1(ff, p["w"]), p["bn"]))
    ff = jnp.transpose(ff.reshape(n, c, 2, h, -1), (0, 1, 3, 4, 2))
    return jnp.fft.irfft2(ff[..., 0] + 1j * ff[..., 1], s=(h, w), norm="ortho")


def _ref_spectral(x, p):
    h = jax.nn.relu(_ref_bn(_ref_conv1x1(x, p["w1"]), p["bn1"]))
    fu = _ref_fourier_unit(h, p["fu"])
    return _ref_conv1x1(h + fu, p["w2"])


def _ref_layer(xl, xg, p, dilation):
    out_l = _ref_conv_reflect(xl, p["w_l2l"], dilation, dilation) + \
            _ref_conv_reflect(xg, p["w_g2l"], dilation, dilation)
    out_g = _ref_conv_reflect(xl, p["w_l2g"], dilation, dilation) + \
            _ref_spectral(xg, p["spec"])
    return jax.nn.relu(_ref_bn(out_l, p["bn_l"])), \
           jax.nn.relu(_ref_bn(out_g, p["bn_g"]))


def _ref_block(xl, xg, params, dilation=1):
    il, ig = xl, xg
    xl, xg = _ref_layer(xl, xg, params["conv1"], dilation)
    xl, xg = _ref_layer(xl, xg, params["conv2"], dilation)
    return il + xl, ig + xg


# ---------------------------------------------------------------------------
if __name__ == "__main__":
    dim, ratio = 8, 0.75
    N, H, W = 2, 16, 16
    dilation = 1
    in_cg = int(dim * ratio)
    in_cl = dim - in_cg

    key = jax.random.PRNGKey(0)
    kx1, kx2, kp = jax.random.split(key, 3)
    x_l = jax.random.normal(kx1, (N, in_cl, H, W), dtype=jnp.float32)
    x_g = jax.random.normal(kx2, (N, in_cg, H, W), dtype=jnp.float32)
    params = init_params(kp, dim, ratio=ratio)

    out_l, out_g = ffc_resnet_block_forward(x_l, x_g, params, dilation=dilation)
    out_l = jax.block_until_ready(out_l)
    out_g = jax.block_until_ready(out_g)
    assert out_l.shape == (N, in_cl, H, W)
    assert out_g.shape == (N, in_cg, H, W)

    ref_l, ref_g = _ref_block(x_l, x_g, params, dilation=dilation)
    ref_l = jax.block_until_ready(ref_l)
    ref_g = jax.block_until_ready(ref_g)
    err_l = float(jnp.max(jnp.abs(out_l - ref_l)))
    err_g = float(jnp.max(jnp.abs(out_g - ref_g)))
    assert err_l < 1e-3, err_l
    assert err_g < 1e-3, err_g

    print("KERNEL_OK")
</pallas_src>

<mosaic_0001>
module attributes {stable_mosaic.version = 11 : i64} {
  func.func @_fused_mm_kernel(%arg0: i32, %arg1: memref<3x6xf32, #tpu.memory_space<vmem>>, %arg2: memref<6x512xf32, #tpu.memory_space<vmem>>, %arg3: memref<3x1xf32, #tpu.memory_space<vmem>>, %arg4: memref<3x1xf32, #tpu.memory_space<vmem>>, %arg5: memref<3x512xf32, #tpu.memory_space<vmem>>) attributes {dimension_semantics = [#tpu.dimension_semantics<parallel>], iteration_bounds = array<i64: 1>, scalar_prefetch = 0 : i64, scratch_operands = 0 : i64, tpu.core_type = #tpu.core_type<tc>, window_params = [{pipeline_mode = #tpu.pipeline_mode<synchronous>, transform_indices = @transform_0, window_bounds = array<i64: 3, 6>}, {transform_indices = @transform_1, window_bounds = array<i64: 6, 512>}, {pipeline_mode = #tpu.pipeline_mode<synchronous>, transform_indices = @transform_2, window_bounds = array<i64: 3, 1>}, {pipeline_mode = #tpu.pipeline_mode<synchronous>, transform_indices = @transform_3, window_bounds = array<i64: 3, 1>}, {transform_indices = @transform_4, window_bounds = array<i64: 3, 512>}]} {
    %c0 = arith.constant 0 : index
    %c0_0 = arith.constant 0 : index
    %0 = vector.load %arg1[%c0, %c0_0] : memref<3x6xf32, #tpu.memory_space<vmem>>, vector<3x6xf32>
    %c0_1 = arith.constant 0 : index
    %c0_2 = arith.constant 0 : index
    %1 = vector.load %arg2[%c0_1, %c0_2] : memref<6x512xf32, #tpu.memory_space<vmem>>, vector<6x512xf32>
    %cst = arith.constant dense<0.000000e+00> : vector<3x512xf32>
    %2 = tpu.matmul %0, %1, %cst {dimension_numbers = #tpu.dot_dimension_numbers<[1], [0], [0], [1], [0, 0, 1, 1], [], []>} : vector<3x6xf32>, vector<6x512xf32>, vector<3x512xf32> -> vector<3x512xf32>
    %c0_3 = arith.constant 0 : index
    %c0_4 = arith.constant 0 : index
    %3 = vector.load %arg3[%c0_3, %c0_4] : memref<3x1xf32, #tpu.memory_space<vmem>>, vector<3x1xf32>
    %4 = vector.broadcast %3 : vector<3x1xf32> to vector<3x512xf32>
    %5 = arith.mulf %2, %4 : vector<3x512xf32>
    %c0_5 = arith.constant 0 : index
    %c0_6 = arith.constant 0 : index
    %6 = vector.load %arg4[%c0_5, %c0_6] : memref<3x1xf32, #tpu.memory_space<vmem>>, vector<3x1xf32>
    %7 = vector.broadcast %6 : vector<3x1xf32> to vector<3x512xf32>
    %8 = arith.addf %5, %7 : vector<3x512xf32>
    %cst_7 = arith.constant 0.000000e+00 : f32
    %9 = vector.broadcast %cst_7 : f32 to vector<3x512xf32>
    %10 = arith.maximumf %8, %9 : vector<3x512xf32>
    %c0_8 = arith.constant 0 : index
    %c0_9 = arith.constant 0 : index
    %11 = vector.load %arg5[%c0_8, %c0_9] : memref<3x512xf32, #tpu.memory_space<vmem>>, vector<3x512xf32>
    tpu.vector_store %arg5[%c0_8, %c0_9], %10 {strides = array<i32>} : memref<3x512xf32, #tpu.memory_space<vmem>>, vector<3x512xf32>,
    return
  }
  func.func @transform_0(%arg0: i32) -> (i32, i32) {
    %c0_i32 = arith.constant 0 : i32
    %c0_i32_0 = arith.constant 0 : i32
    %c0_i32_1 = arith.constant 0 : i32
    return %c0_i32, %c0_i32_0 : i32, i32
  }
  func.func @transform_1(%arg0: i32) -> (i32, i32) {
    %c0_i32 = arith.constant 0 : i32
    %c0_i32_0 = arith.constant 0 : i32
    return %c0_i32, %arg0 : i32, i32
  }
  func.func @transform_2(%arg0: i32) -> (i32, i32) {
    %c0_i32 = arith.constant 0 : i32
    %c0_i32_0 = arith.constant 0 : i32
    %c0_i32_1 = arith.constant 0 : i32
    return %c0_i32, %c0_i32_0 : i32, i32
  }
  func.func @transform_3(%arg0: i32) -> (i32, i32) {
    %c0_i32 = arith.constant 0 : i32
    %c0_i32_0 = arith.constant 0 : i32
    %c0_i32_1 = arith.constant 0 : i32
    return %c0_i32, %c0_i32_0 : i32, i32
  }
  func.func @transform_4(%arg0: i32) -> (i32, i32) {
    %c0_i32 = arith.constant 0 : i32
    %c0_i32_0 = arith.constant 0 : i32
    return %c0_i32, %arg0 : i32, i32
  }
}

module attributes {stable_mosaic.version = 11 : i64} {
  func.func @_fused_mm_kernel(%arg0: i32, %arg1: memref<6x6xf32, #tpu.memory_space<vmem>>, %arg2: memref<6x288xf32, #tpu.memory_space<vmem>>, %arg3: memref<6x1xf32, #tpu.memory_space<vmem>>, %arg4: memref<6x1xf32, #tpu.memory_space<vmem>>, %arg5: memref<6x288xf32, #tpu.memory_space<vmem>>) attributes {dimension_semantics = [#tpu.dimension_semantics<parallel>], iteration_bounds = array<i64: 1>, scalar_prefetch = 0 : i64, scratch_operands = 0 : i64, tpu.core_type = #tpu.core_type<tc>, window_params = [{pipeline_mode = #tpu.pipeline_mode<synchronous>, transform_indices = @transform_0, window_bounds = array<i64: 6, 6>}, {transform_indices = @transform_1, window_bounds = array<i64: 6, 288>}, {pipeline_mode = #tpu.pipeline_mode<synchronous>, transform_indices = @transform_2, window_bounds = array<i64: 6, 1>}, {pipeline_mode = #tpu.pipeline_mode<synchronous>, transform_indices = @transform_3, window_bounds = array<i64: 6, 1>}, {transform_indices = @transform_4, window_bounds = array<i64: 6, 288>}]} {
    %c0 = arith.constant 0 : index
    %c0_0 = arith.constant 0 : index
    %0 = vector.load %arg1[%c0, %c0_0] : memref<6x6xf32, #tpu.memory_space<vmem>>, vector<6x6xf32>
    %c0_1 = arith.constant 0 : index
    %c0_2 = arith.constant 0 : index
    %1 = vector.load %arg2[%c0_1, %c0_2] : memref<6x288xf32, #tpu.memory_space<vmem>>, vector<6x288xf32>
    %cst = arith.constant dense<0.000000e+00> : vector<6x288xf32>
    %2 = tpu.matmul %0, %1, %cst {dimension_numbers = #tpu.dot_dimension_numbers<[1], [0], [0], [1], [0, 0, 1, 1], [], []>} : vector<6x6xf32>, vector<6x288xf32>, vector<6x288xf32> -> vector<6x288xf32>
    %c0_3 = arith.constant 0 : index
    %c0_4 = arith.constant 0 : index
    %3 = vector.load %arg3[%c0_3, %c0_4] : memref<6x1xf32, #tpu.memory_space<vmem>>, vector<6x1xf32>
    %4 = vector.broadcast %3 : vector<6x1xf32> to vector<6x288xf32>
    %5 = arith.mulf %2, %4 : vector<6x288xf32>
    %c0_5 = arith.constant 0 : index
    %c0_6 = arith.constant 0 : index
    %6 = vector.load %arg4[%c0_5, %c0_6] : memref<6x1xf32, #tpu.memory_space<vmem>>, vector<6x1xf32>
    %7 = vector.broadcast %6 : vector<6x1xf32> to vector<6x288xf32>
    %8 = arith.addf %5, %7 : vector<6x288xf32>
    %cst_7 = arith.constant 0.000000e+00 : f32
    %9 = vector.broadcast %cst_7 : f32 to vector<6x288xf32>
    %10 = arith.maximumf %8, %9 : vector<6x288xf32>
    %c0_8 = arith.constant 0 : index
    %c0_9 = arith.constant 0 : index
    %11 = vector.load %arg5[%c0_8, %c0_9] : memref<6x288xf32, #tpu.memory_space<vmem>>, vector<6x288xf32>
    tpu.vector_store %arg5[%c0_8, %c0_9], %10 {strides = array<i32>} : memref<6x288xf32, #tpu.memory_space<vmem>>, vector<6x288xf32>,
    return
  }
  func.func @transform_0(%arg0: i32) -> (i32, i32) {
    %c0_i32 = arith.constant 0 : i32
    %c0_i32_0 = arith.constant 0 : i32
    %c0_i32_1 = arith.constant 0 : i32
    return %c0_i32, %c0_i32_0 : i32, i32
  }
  func.func @transform_1(%arg0: i32) -> (i32, i32) {
    %c0_i32 = arith.constant 0 : i32
    %c0_i32_0 = arith.constant 0 : i32
    return %c0_i32, %arg0 : i32, i32
  }
  func.func @transform_2(%arg0: i32) -> (i32, i32) {
    %c0_i32 = arith.constant 0 : i32
    %c0_i32_0 = arith.constant 0 : i32
    %c0_i32_1 = arith.constant 0 : i32
    return %c0_i32, %c0_i32_0 : i32, i32
  }
  func.func @transform_3(%arg0: i32) -> (i32, i32) {
    %c0_i32 = arith.constant 0 : i32
    %c0_i32_0 = arith.constant 0 : i32
    %c0_i32_1 = arith.constant 0 : i32
    return %c0_i32, %c0_i32_0 : i32, i32
  }
  func.func @transform_4(%arg0: i32) -> (i32, i32) {
    %c0_i32 = arith.constant 0 : i32
    %c0_i32_0 = arith.constant 0 : i32
    return %c0_i32, %arg0 : i32, i32
  }
}

module attributes {stable_mosaic.version = 11 : i64} {
  func.func @_fused_mm_kernel(%arg0: i32, %arg1: memref<6x18xf32, #tpu.memory_space<vmem>>, %arg2: memref<18x512xf32, #tpu.memory_space<vmem>>, %arg3: memref<6x1xf32, #tpu.memory_space<vmem>>, %arg4: memref<6x1xf32, #tpu.memory_space<vmem>>, %arg5: memref<6x512xf32, #tpu.memory_space<vmem>>, %arg6: memref<6x512xf32, #tpu.memory_space<vmem>>) attributes {dimension_semantics = [#tpu.dimension_semantics<parallel>], iteration_bounds = array<i64: 1>, scalar_prefetch = 0 : i64, scratch_operands = 0 : i64, tpu.core_type = #tpu.core_type<tc>, window_params = [{pipeline_mode = #tpu.pipeline_mode<synchronous>, transform_indices = @transform_0, window_bounds = array<i64: 6, 18>}, {transform_indices = @transform_1, window_bounds = array<i64: 18, 512>}, {pipeline_mode = #tpu.pipeline_mode<synchronous>, transform_indices = @transform_2, window_bounds = array<i64: 6, 1>}, {pipeline_mode = #tpu.pipeline_mode<synchronous>, transform_indices = @transform_3, window_bounds = array<i64: 6, 1>}, {transform_indices = @transform_4, window_bounds = array<i64: 6, 512>}, {transform_indices = @transform_5, window_bounds = array<i64: 6, 512>}]} {
    %c0 = arith.constant 0 : index
    %c0_0 = arith.constant 0 : index
    %0 = vector.load %arg1[%c0, %c0_0] : memref<6x18xf32, #tpu.memory_space<vmem>>, vector<6x18xf32>
    %c0_1 = arith.constant 0 : index
    %c0_2 = arith.constant 0 : index
    %1 = vector.load %arg2[%c0_1, %c0_2] : memref<18x512xf32, #tpu.memory_space<vmem>>, vector<18x512xf32>
    %cst = arith.constant dense<0.000000e+00> : vector<6x512xf32>
    %2 = tpu.matmul %0, %1, %cst {dimension_numbers = #tpu.dot_dimension_numbers<[1], [0], [0], [1], [0, 0, 1, 1], [], []>} : vector<6x18xf32>, vector<18x512xf32>, vector<6x512xf32> -> vector<6x512xf32>
    %c0_3 = arith.constant 0 : index
    %c0_4 = arith.constant 0 : index
    %3 = vector.load %arg5[%c0_3, %c0_4] : memref<6x512xf32, #tpu.memory_space<vmem>>, vector<6x512xf32>
    %4 = arith.addf %2, %3 : vector<6x512xf32>
    %c0_5 = arith.constant 0 : index
    %c0_6 = arith.constant 0 : index
    %5 = vector.load %arg3[%c0_5, %c0_6] : memref<6x1xf32, #tpu.memory_space<vmem>>, vector<6x1xf32>
    %6 = vector.broadcast %5 : vector<6x1xf32> to vector<6x512xf32>
    %7 = arith.mulf %4, %6 : vector<6x512xf32>
    %c0_7 = arith.constant 0 : index
    %c0_8 = arith.constant 0 : index
    %8 = vector.load %arg4[%c0_7, %c0_8] : memref<6x1xf32, #tpu.memory_space<vmem>>, vector<6x1xf32>
    %9 = vector.broadcast %8 : vector<6x1xf32> to vector<6x512xf32>
    %10 = arith.addf %7, %9 : vector<6x512xf32>
    %cst_9 = arith.constant 0.000000e+00 : f32
    %11 = vector.broadcast %cst_9 : f32 to vector<6x512xf32>
    %12 = arith.maximumf %10, %11 : vector<6x512xf32>
    %c0_10 = arith.constant 0 : index
    %c0_11 = arith.constant 0 : index
    %13 = vector.load %arg6[%c0_10, %c0_11] : memref<6x512xf32, #tpu.memory_space<vmem>>, vector<6x512xf32>
    tpu.vector_store %arg6[%c0_10, %c0_11], %12 {strides = array<i32>} : memref<6x512xf32, #tpu.memory_space<vmem>>, vector<6x512xf32>,
    return
  }
  func.func @transform_0(%arg0: i32) -> (i32, i32) {
    %c0_i32 = arith.constant 0 : i32
    %c0_i32_0 = arith.constant 0 : i32
    %c0_i32_1 = arith.constant 0 : i32
    return %c0_i32, %c0_i32_0 : i32, i32
  }
  func.func @transform_1(%arg0: i32) -> (i32, i32) {
    %c0_i32 = arith.constant 0 : i32
    %c0_i32_0 = arith.constant 0 : i32
    return %c0_i32, %arg0 : i32, i32
  }
  func.func @transform_2(%arg0: i32) -> (i32, i32) {
    %c0_i32 = arith.constant 0 : i32
    %c0_i32_0 = arith.constant 0 : i32
    %c0_i32_1 = arith.constant 0 : i32
    return %c0_i32, %c0_i32_0 : i32, i32
  }
  func.func @transform_3(%arg0: i32) -> (i32, i32) {
    %c0_i32 = arith.constant 0 : i32
    %c0_i32_0 = arith.constant 0 : i32
    %c0_i32_1 = arith.constant 0 : i32
    return %c0_i32, %c0_i32_0 : i32, i32
  }
  func.func @transform_4(%arg0: i32) -> (i32, i32) {
    %c0_i32 = arith.constant 0 : i32
    %c0_i32_0 = arith.constant 0 : i32
    return %c0_i32, %arg0 : i32, i32
  }
  func.func @transform_5(%arg0: i32) -> (i32, i32) {
    %c0_i32 = arith.constant 0 : i32
    %c0_i32_0 = arith.constant 0 : i32
    return %c0_i32, %arg0 : i32, i32
  }
}

module attributes {stable_mosaic.version = 11 : i64} {
  func.func @_fused_mm_kernel(%arg0: i32, %arg1: memref<6x3xf32, #tpu.memory_space<vmem>>, %arg2: memref<3x512xf32, #tpu.memory_space<vmem>>, %arg3: memref<6x512xf32, #tpu.memory_space<vmem>>) attributes {dimension_semantics = [#tpu.dimension_semantics<parallel>], iteration_bounds = array<i64: 1>, scalar_prefetch = 0 : i64, scratch_operands = 0 : i64, tpu.core_type = #tpu.core_type<tc>, window_params = [{pipeline_mode = #tpu.pipeline_mode<synchronous>, transform_indices = @transform_0, window_bounds = array<i64: 6, 3>}, {transform_indices = @transform_1, window_bounds = array<i64: 3, 512>}, {transform_indices = @transform_2, window_bounds = array<i64: 6, 512>}]} {
    %c0 = arith.constant 0 : index
    %c0_0 = arith.constant 0 : index
    %0 = vector.load %arg1[%c0, %c0_0] : memref<6x3xf32, #tpu.memory_space<vmem>>, vector<6x3xf32>
    %c0_1 = arith.constant 0 : index
    %c0_2 = arith.constant 0 : index
    %1 = vector.load %arg2[%c0_1, %c0_2] : memref<3x512xf32, #tpu.memory_space<vmem>>, vector<3x512xf32>
    %cst = arith.constant dense<0.000000e+00> : vector<6x512xf32>
    %2 = tpu.matmul %0, %1, %cst {dimension_numbers = #tpu.dot_dimension_numbers<[1], [0], [0], [1], [0, 0, 1, 1], [], []>} : vector<6x3xf32>, vector<3x512xf32>, vector<6x512xf32> -> vector<6x512xf32>
    %c0_3 = arith.constant 0 : index
    %c0_4 = arith.constant 0 : index
    %3 = vector.load %arg3[%c0_3, %c0_4] : memref<6x512xf32, #tpu.memory_space<vmem>>, vector<6x512xf32>
    tpu.vector_store %arg3[%c0_3, %c0_4], %2 {strides = array<i32>} : memref<6x512xf32, #tpu.memory_space<vmem>>, vector<6x512xf32>,
    return
  }
  func.func @transform_0(%arg0: i32) -> (i32, i32) {
    %c0_i32 = arith.constant 0 : i32
    %c0_i32_0 = arith.constant 0 : i32
    %c0_i32_1 = arith.constant 0 : i32
    return %c0_i32, %c0_i32_0 : i32, i32
  }
  func.func @transform_1(%arg0: i32) -> (i32, i32) {
    %c0_i32 = arith.constant 0 : i32
    %c0_i32_0 = arith.constant 0 : i32
    return %c0_i32, %arg0 : i32, i32
  }
  func.func @transform_2(%arg0: i32) -> (i32, i32) {
    %c0_i32 = arith.constant 0 : i32
    %c0_i32_0 = arith.constant 0 : i32
    return %c0_i32, %arg0 : i32, i32
  }
}

module attributes {stable_mosaic.version = 11 : i64} {
  func.func @_fused_mm_kernel(%arg0: i32, %arg1: memref<2x72xf32, #tpu.memory_space<vmem>>, %arg2: memref<72x512xf32, #tpu.memory_space<vmem>>, %arg3: memref<2x1xf32, #tpu.memory_space<vmem>>, %arg4: memref<2x1xf32, #tpu.memory_space<vmem>>, %arg5: memref<2x512xf32, #tpu.memory_space<vmem>>) attributes {dimension_semantics = [#tpu.dimension_semantics<parallel>], iteration_bounds = array<i64: 1>, scalar_prefetch = 0 : i64, scratch_operands = 0 : i64, tpu.core_type = #tpu.core_type<tc>, window_params = [{pipeline_mode = #tpu.pipeline_mode<synchronous>, transform_indices = @transform_0, window_bounds = array<i64: 2, 72>}, {transform_indices = @transform_1, window_bounds = array<i64: 72, 512>}, {pipeline_mode = #tpu.pipeline_mode<synchronous>, transform_indices = @transform_2, window_bounds = array<i64: 2, 1>}, {pipeline_mode = #tpu.pipeline_mode<synchronous>, transform_indices = @transform_3, window_bounds = array<i64: 2, 1>}, {transform_indices = @transform_4, window_bounds = array<i64: 2, 512>}]} {
    %c0 = arith.constant 0 : index
    %c0_0 = arith.constant 0 : index
    %0 = vector.load %arg1[%c0, %c0_0] : memref<2x72xf32, #tpu.memory_space<vmem>>, vector<2x72xf32>
    %c0_1 = arith.constant 0 : index
    %c0_2 = arith.constant 0 : index
    %1 = vector.load %arg2[%c0_1, %c0_2] : memref<72x512xf32, #tpu.memory_space<vmem>>, vector<72x512xf32>
    %cst = arith.constant dense<0.000000e+00> : vector<2x512xf32>
    %2 = tpu.matmul %0, %1, %cst {dimension_numbers = #tpu.dot_dimension_numbers<[1], [0], [0], [1], [0, 0, 1, 1], [], []>} : vector<2x72xf32>, vector<72x512xf32>, vector<2x512xf32> -> vector<2x512xf32>
    %c0_3 = arith.constant 0 : index
    %c0_4 = arith.constant 0 : index
    %3 = vector.load %arg3[%c0_3, %c0_4] : memref<2x1xf32, #tpu.memory_space<vmem>>, vector<2x1xf32>
    %4 = vector.broadcast %3 : vector<2x1xf32> to vector<2x512xf32>
    %5 = arith.mulf %2, %4 : vector<2x512xf32>
    %c0_5 = arith.constant 0 : index
    %c0_6 = arith.constant 0 : index
    %6 = vector.load %arg4[%c0_5, %c0_6] : memref<2x1xf32, #tpu.memory_space<vmem>>, vector<2x1xf32>
    %7 = vector.broadcast %6 : vector<2x1xf32> to vector<2x512xf32>
    %8 = arith.addf %5, %7 : vector<2x512xf32>
    %cst_7 = arith.constant 0.000000e+00 : f32
    %9 = vector.broadcast %cst_7 : f32 to vector<2x512xf32>
    %10 = arith.maximumf %8, %9 : vector<2x512xf32>
    %c0_8 = arith.constant 0 : index
    %c0_9 = arith.constant 0 : index
    %11 = vector.load %arg5[%c0_8, %c0_9] : memref<2x512xf32, #tpu.memory_space<vmem>>, vector<2x512xf32>
    tpu.vector_store %arg5[%c0_8, %c0_9], %10 {strides = array<i32>} : memref<2x512xf32, #tpu.memory_space<vmem>>, vector<2x512xf32>,
    return
  }
  func.func @transform_0(%arg0: i32) -> (i32, i32) {
    %c0_i32 = arith.constant 0 : i32
    %c0_i32_0 = arith.constant 0 : i32
    %c0_i32_1 = arith.constant 0 : i32
    return %c0_i32, %c0_i32_0 : i32, i32
  }
  func.func @transform_1(%arg0: i32) -> (i32, i32) {
    %c0_i32 = arith.constant 0 : i32
    %c0_i32_0 = arith.constant 0 : i32
    return %c0_i32, %arg0 : i32, i32
  }
  func.func @transform_2(%arg0: i32) -> (i32, i32) {
    %c0_i32 = arith.constant 0 : i32
    %c0_i32_0 = arith.constant 0 : i32
    %c0_i32_1 = arith.constant 0 : i32
    return %c0_i32, %c0_i32_0 : i32, i32
  }
  func.func @transform_3(%arg0: i32) -> (i32, i32) {
    %c0_i32 = arith.constant 0 : i32
    %c0_i32_0 = arith.constant 0 : i32
    %c0_i32_1 = arith.constant 0 : i32
    return %c0_i32, %c0_i32_0 : i32, i32
  }
  func.func @transform_4(%arg0: i32) -> (i32, i32) {
    %c0_i32 = arith.constant 0 : i32
    %c0_i32_0 = arith.constant 0 : i32
    return %c0_i32, %arg0 : i32, i32
  }
}

module attributes {stable_mosaic.version = 11 : i64} {
  func.func @_fused_mm_kernel(%arg0: i32, %arg1: memref<2x72xf32, #tpu.memory_space<vmem>>, %arg2: memref<72x512xf32, #tpu.memory_space<vmem>>, %arg3: memref<2x1xf32, #tpu.memory_space<vmem>>, %arg4: memref<2x1xf32, #tpu.memory_space<vmem>>, %arg5: memref<2x512xf32, #tpu.memory_space<vmem>>, %arg6: memref<2x512xf32, #tpu.memory_space<vmem>>) attributes {dimension_semantics = [#tpu.dimension_semantics<parallel>], iteration_bounds = array<i64: 1>, scalar_prefetch = 0 : i64, scratch_operands = 0 : i64, tpu.core_type = #tpu.core_type<tc>, window_params = [{pipeline_mode = #tpu.pipeline_mode<synchronous>, transform_indices = @transform_0, window_bounds = array<i64: 2, 72>}, {transform_indices = @transform_1, window_bounds = array<i64: 72, 512>}, {pipeline_mode = #tpu.pipeline_mode<synchronous>, transform_indices = @transform_2, window_bounds = array<i64: 2, 1>}, {pipeline_mode = #tpu.pipeline_mode<synchronous>, transform_indices = @transform_3, window_bounds = array<i64: 2, 1>}, {transform_indices = @transform_4, window_bounds = array<i64: 2, 512>}, {transform_indices = @transform_5, window_bounds = array<i64: 2, 512>}]} {
    %c0 = arith.constant 0 : index
    %c0_0 = arith.constant 0 : index
    %0 = vector.load %arg1[%c0, %c0_0] : memref<2x72xf32, #tpu.memory_space<vmem>>, vector<2x72xf32>
    %c0_1 = arith.constant 0 : index
    %c0_2 = arith.constant 0 : index
    %1 = vector.load %arg2[%c0_1, %c0_2] : memref<72x512xf32, #tpu.memory_space<vmem>>, vector<72x512xf32>
    %cst = arith.constant dense<0.000000e+00> : vector<2x512xf32>
    %2 = tpu.matmul %0, %1, %cst {dimension_numbers = #tpu.dot_dimension_numbers<[1], [0], [0], [1], [0, 0, 1, 1], [], []>} : vector<2x72xf32>, vector<72x512xf32>, vector<2x512xf32> -> vector<2x512xf32>
    %c0_3 = arith.constant 0 : index
    %c0_4 = arith.constant 0 : index
    %3 = vector.load %arg3[%c0_3, %c0_4] : memref<2x1xf32, #tpu.memory_space<vmem>>, vector<2x1xf32>
    %4 = vector.broadcast %3 : vector<2x1xf32> to vector<2x512xf32>
    %5 = arith.mulf %2, %4 : vector<2x512xf32>
    %c0_5 = arith.constant 0 : index
    %c0_6 = arith.constant 0 : index
    %6 = vector.load %arg4[%c0_5, %c0_6] : memref<2x1xf32, #tpu.memory_space<vmem>>, vector<2x1xf32>
    %7 = vector.broadcast %6 : vector<2x1xf32> to vector<2x512xf32>
    %8 = arith.addf %5, %7 : vector<2x512xf32>
    %cst_7 = arith.constant 0.000000e+00 : f32
    %9 = vector.broadcast %cst_7 : f32 to vector<2x512xf32>
    %10 = arith.maximumf %8, %9 : vector<2x512xf32>
    %c0_8 = arith.constant 0 : index
    %c0_9 = arith.constant 0 : index
    %11 = vector.load %arg5[%c0_8, %c0_9] : memref<2x512xf32, #tpu.memory_space<vmem>>, vector<2x512xf32>
    %12 = arith.addf %10, %11 : vector<2x512xf32>
    %c0_10 = arith.constant 0 : index
    %c0_11 = arith.constant 0 : index
    %13 = vector.load %arg6[%c0_10, %c0_11] : memref<2x512xf32, #tpu.memory_space<vmem>>, vector<2x512xf32>
    tpu.vector_store %arg6[%c0_10, %c0_11], %12 {strides = array<i32>} : memref<2x512xf32, #tpu.memory_space<vmem>>, vector<2x512xf32>,
    return
  }
  func.func @transform_0(%arg0: i32) -> (i32, i32) {
    %c0_i32 = arith.constant 0 : i32
    %c0_i32_0 = arith.constant 0 : i32
    %c0_i32_1 = arith.constant 0 : i32
    return %c0_i32, %c0_i32_0 : i32, i32
  }
  func.func @transform_1(%arg0: i32) -> (i32, i32) {
    %c0_i32 = arith.constant 0 : i32
    %c0_i32_0 = arith.constant 0 : i32
    return %c0_i32, %arg0 : i32, i32
  }
  func.func @transform_2(%arg0: i32) -> (i32, i32) {
    %c0_i32 = arith.constant 0 : i32
    %c0_i32_0 = arith.constant 0 : i32
    %c0_i32_1 = arith.constant 0 : i32
    return %c0_i32, %c0_i32_0 : i32, i32
  }
  func.func @transform_3(%arg0: i32) -> (i32, i32) {
    %c0_i32 = arith.constant 0 : i32
    %c0_i32_0 = arith.constant 0 : i32
    %c0_i32_1 = arith.constant 0 : i32
    return %c0_i32, %c0_i32_0 : i32, i32
  }
  func.func @transform_4(%arg0: i32) -> (i32, i32) {
    %c0_i32 = arith.constant 0 : i32
    %c0_i32_0 = arith.constant 0 : i32
    return %c0_i32, %arg0 : i32, i32
  }
  func.func @transform_5(%arg0: i32) -> (i32, i32) {
    %c0_i32 = arith.constant 0 : i32
    %c0_i32_0 = arith.constant 0 : i32
    return %c0_i32, %arg0 : i32, i32
  }
}

module attributes {stable_mosaic.version = 11 : i64} {
  func.func @_fused_mm_kernel(%arg0: i32, %arg1: memref<6x18xf32, #tpu.memory_space<vmem>>, %arg2: memref<18x512xf32, #tpu.memory_space<vmem>>, %arg3: memref<6x1xf32, #tpu.memory_space<vmem>>, %arg4: memref<6x1xf32, #tpu.memory_space<vmem>>, %arg5: memref<6x512xf32, #tpu.memory_space<vmem>>, %arg6: memref<6x512xf32, #tpu.memory_space<vmem>>, %arg7: memref<6x512xf32, #tpu.memory_space<vmem>>) attributes {dimension_semantics = [#tpu.dimension_semantics<parallel>], iteration_bounds = array<i64: 1>, scalar_prefetch = 0 : i64, scratch_operands = 0 : i64, tpu.core_type = #tpu.core_type<tc>, window_params = [{pipeline_mode = #tpu.pipeline_mode<synchronous>, transform_indices = @transform_0, window_bounds = array<i64: 6, 18>}, {transform_indices = @transform_1, window_bounds = array<i64: 18, 512>}, {pipeline_mode = #tpu.pipeline_mode<synchronous>, transform_indices = @transform_2, window_bounds = array<i64: 6, 1>}, {pipeline_mode = #tpu.pipeline_mode<synchronous>, transform_indices = @transform_3, window_bounds = array<i64: 6, 1>}, {transform_indices = @transform_4, window_bounds = array<i64: 6, 512>}, {transform_indices = @transform_5, window_bounds = array<i64: 6, 512>}, {transform_indices = @transform_6, window_bounds = array<i64: 6, 512>}]} {
    %c0 = arith.constant 0 : index
    %c0_0 = arith.constant 0 : index
    %0 = vector.load %arg1[%c0, %c0_0] : memref<6x18xf32, #tpu.memory_space<vmem>>, vector<6x18xf32>
    %c0_1 = arith.constant 0 : index
    %c0_2 = arith.constant 0 : index
    %1 = vector.load %arg2[%c0_1, %c0_2] : memref<18x512xf32, #tpu.memory_space<vmem>>, vector<18x512xf32>
    %cst = arith.constant dense<0.000000e+00> : vector<6x512xf32>
    %2 = tpu.matmul %0, %1, %cst {dimension_numbers = #tpu.dot_dimension_numbers<[1], [0], [0], [1], [0, 0, 1, 1], [], []>} : vector<6x18xf32>, vector<18x512xf32>, vector<6x512xf32> -> vector<6x512xf32>
    %c0_3 = arith.constant 0 : index
    %c0_4 = arith.constant 0 : index
    %3 = vector.load %arg5[%c0_3, %c0_4] : memref<6x512xf32, #tpu.memory_space<vmem>>, vector<6x512xf32>
    %4 = arith.addf %2, %3 : vector<6x512xf32>
    %c0_5 = arith.constant 0 : index
    %c0_6 = arith.constant 0 : index
    %5 = vector.load %arg3[%c0_5, %c0_6] : memref<6x1xf32, #tpu.memory_space<vmem>>, vector<6x1xf32>
    %6 = vector.broadcast %5 : vector<6x1xf32> to vector<6x512xf32>
    %7 = arith.mulf %4, %6 : vector<6x512xf32>
    %c0_7 = arith.constant 0 : index
    %c0_8 = arith.constant 0 : index
    %8 = vector.load %arg4[%c0_7, %c0_8] : memref<6x1xf32, #tpu.memory_space<vmem>>, vector<6x1xf32>
    %9 = vector.broadcast %8 : vector<6x1xf32> to vector<6x512xf32>
    %10 = arith.addf %7, %9 : vector<6x512xf32>
    %cst_9 = arith.constant 0.000000e+00 : f32
    %11 = vector.broadcast %cst_9 : f32 to vector<6x512xf32>
    %12 = arith.maximumf %10, %11 : vector<6x512xf32>
    %c0_10 = arith.constant 0 : index
    %c0_11 = arith.constant 0 : index
    %13 = vector.load %arg6[%c0_10, %c0_11] : memref<6x512xf32, #tpu.memory_space<vmem>>, vector<6x512xf32>
    %14 = arith.addf %12, %13 : vector<6x512xf32>
    %c0_12 = arith.constant 0 : index
    %c0_13 = arith.constant 0 : index
    %15 = vector.load %arg7[%c0_12, %c0_13] : memref<6x512xf32, #tpu.memory_space<vmem>>, vector<6x512xf32>
    tpu.vector_store %arg7[%c0_12, %c0_13], %14 {strides = array<i32>} : memref<6x512xf32, #tpu.memory_space<vmem>>, vector<6x512xf32>,
    return
  }
  func.func @transform_0(%arg0: i32) -> (i32, i32) {
    %c0_i32 = arith.constant 0 : i32
    %c0_i32_0 = arith.constant 0 : i32
    %c0_i32_1 = arith.constant 0 : i32
    return %c0_i32, %c0_i32_0 : i32, i32
  }
  func.func @transform_1(%arg0: i32) -> (i32, i32) {
    %c0_i32 = arith.constant 0 : i32
    %c0_i32_0 = arith.constant 0 : i32
    return %c0_i32, %arg0 : i32, i32
  }
  func.func @transform_2(%arg0: i32) -> (i32, i32) {
    %c0_i32 = arith.constant 0 : i32
    %c0_i32_0 = arith.constant 0 : i32
    %c0_i32_1 = arith.constant 0 : i32
    return %c0_i32, %c0_i32_0 : i32, i32
  }
  func.func @transform_3(%arg0: i32) -> (i32, i32) {
    %c0_i32 = arith.constant 0 : i32
    %c0_i32_0 = arith.constant 0 : i32
    %c0_i32_1 = arith.constant 0 : i32
    return %c0_i32, %c0_i32_0 : i32, i32
  }
  func.func @transform_4(%arg0: i32) -> (i32, i32) {
    %c0_i32 = arith.constant 0 : i32
    %c0_i32_0 = arith.constant 0 : i32
    return %c0_i32, %arg0 : i32, i32
  }
  func.func @transform_5(%arg0: i32) -> (i32, i32) {
    %c0_i32 = arith.constant 0 : i32
    %c0_i32_0 = arith.constant 0 : i32
    return %c0_i32, %arg0 : i32, i32
  }
  func.func @transform_6(%arg0: i32) -> (i32, i32) {
    %c0_i32 = arith.constant 0 : i32
    %c0_i32_0 = arith.constant 0 : i32
    return %c0_i32, %arg0 : i32, i32
  }
}

</mosaic_0001>

<bundles_post_ra>
// kernel: ffc_resnet_block_forward.11
= control target key start
LH: loop header
LB: loop body
LE: loop exit
PB: predicated region body
PF: predicated region fallthrough
CT: control target
= control target key end

     0   :  { %vm26_vm0 = vcmask 1045504   ;;  %vm22_vm1 = vcmask 48128   ;;  %v228_v3 = vmov 0.0   ;;  %v229_v7 = vmov 0   ;;  %s284_s1 = inlined_call_operand.vmem [shape: f32[6,512], index: 1, kind: input, shape index: {}]   ;;  %s285_s0 = inlined_call_operand.vmem [shape: f32[3,6], index: 0, kind: input, shape index: {}]   ;;  %s286_s2 = inlined_call_operand.vmem [shape: f32[3,1], index: 2, kind: input, shape index: {}]   ;;  %s287_s3 = inlined_call_operand.vmem [shape: f32[3,1], index: 3, kind: input, shape index: {}]   ;;  %s288_s4 = inlined_call_operand.vmem [shape: f32[3,512], index: 4, kind: output, shape index: {}]  }
   0x1   :  { %v19_v0 = vld [vmem:[%s284_s1 + $0x8] sm:$0x3f]  ;;  %v21_v1 = vld [vmem:[%s284_s1 + $0x18] sm:$0x3f]  ;;  %v18_v2 = vld [vmem:[%s284_s1] sm:$0x3f]  ;;  %103 = vmatprep.mubr.f32.mxu0 %v228_v3  ;;  %174 = vmatprep.mubr.f32.mxu1 %v228_v3 }
   0x2   :  { %219 = vmatprep.subr.msk.mxu0 %vm26_vm0, %v19_v0  ;;  %222 = vmatprep.subr.msk.mxu1 %vm26_vm0, %v21_v1  ;;  %v20_v4 = vld [vmem:[%s284_s1 + $0x10] sm:$0x3f]  ;;  %v17_v5 = vld [vmem:[%s285_s0] sm:$0x7] }
   0x3   :  { %220 = vmatpush1.msk.msra.mxu0 %vm26_vm0, %v18_v2  ;;  %223 = vmatpush1.msk.msra.mxu1 %vm26_vm0, %v20_v4  ;;  %v181_v6 = vld [vmem:[%s286_s2] sm:$0x7] }
   0x4   :  { %221 = vmatmul.mubr.msk.f32.vlgmr.msra.gmra.mrb[0].mxu0 %vm22_vm1, %v17_v5  ;;  %224 = vmatmul.mubr.msk.f32.vlgmr.msra.gmra.mrb[0].mxu1 %vm22_vm1, %v17_v5  ;;  %v191_v8 = vld [vmem:[%s287_s3] sm:$0x7] }
   0x5   :  { %227 = vset.pattern.permute.xlu0 %v229_v7 }
   0x6   :  { %184 = vperm.xlu0 %227, %v181_v6  }
   0xa   :  { %194 = vperm.xlu0 %227, %v191_v8  }
  0x85   :  { %v185_v9 = vpop.permute.xlu0 %184 }
  0x89   :  { %v195_v16 = vpop.permute.xlu0 %194 }
  0xd7   :  { %v105_v10 = vpop.f32.mrb[0].mxu0  ;;  %v176_v11 = vpop.f32.mrb[0].mxu1 }
  0xd8   :  { %v187_v12 = vmul.f32 %v185_v9, %v105_v10  ;;  %v189_v13 = vmul.f32 %v185_v9, %v176_v11  ;;  %v107_v14 = vpop.f32.mrb[1].mxu0  ;;  %v178_v15 = vpop.f32.mrb[1].mxu1 }
  0xd9   :  { %v188_v17 = vmul.f32 %v185_v9, %v107_v14  ;;  %v190_v18 = vmul.f32 %v185_v9, %v178_v15 }
  0xda   :  { %v197_v19 = vadd.f32 %v195_v16, %v187_v12  ;;  %v199_v20 = vadd.f32 %v195_v16, %v189_v13 }
  0xdb   :  { %v198_v21 = vadd.f32 %v195_v16, %v188_v17  ;;  %v200_v22 = vadd.f32 %v195_v16, %v190_v18 }
  0xdc   :  { %v201_v23 = vmax.f32 %v197_v19, 0.0  ;;  %v203_v24 = vmax.f32 %v199_v20, 0.0 }
  0xdd   :  { %v202_v25 = vmax.f32 %v198_v21, 0.0  ;;  %v204_v26 = vmax.f32 %v200_v22, 0.0 }
  0xdf   :  { %v209_v27 = vcombine.low %v201_v23, %v202_v25  ;;  %v210_v28 = vcombine.low %v203_v24, %v204_v26 }
  0xe1   :  { %213 = vst [vmem:[%s288_s4] sm:$0x77] %v209_v27  ;;  %214 = vst [vmem:[%s288_s4 + $0x8] sm:$0x77] %v210_v28 }

// kernel: ffc_resnet_block_forward.12
= control target key start
LH: loop header
LB: loop body
LE: loop exit
PB: predicated region body
PF: predicated region fallthrough
CT: control target
= control target key end

     0   :  { %vm25_vm0 = vcmask 1045504   ;;  %vm21_vm1 = vcmask 48128   ;;  %v221_v0 = vmov 0.0   ;;  %vm222_vm2 = vmmov 0   ;;  %s278_s1 = inlined_call_operand.vmem [shape: f32[6,288], index: 1, kind: input, shape index: {}]   ;;  %s279_s0 = inlined_call_operand.vmem [shape: f32[6,6], index: 0, kind: input, shape index: {}]   ;;  %s280_s2 = inlined_call_operand.vmem [shape: f32[6,1], index: 2, kind: input, shape index: {}]   ;;  %s281_s3 = inlined_call_operand.vmem [shape: f32[6,1], index: 3, kind: input, shape index: {}]   ;;  %s282_s4 = inlined_call_operand.vmem [shape: f32[6,288], index: 4, kind: output, shape index: {}]  }
   0x1   :  { %212 = vmatprep.subr.mxu1 %v221_v0  ;;  %v19_v1 = vld [vmem:[%s278_s1 + $0x8] sm:$0x3f]  ;;  %v20_v2 = vld [vmem:[%s278_s1 + $0x10] sm:$0x3f]  ;;  %214 = vmatprep.mubr.msk.f32.mxu1 %vm222_vm2, %v221_v0  ;;  %v18_v3 = vld [vmem:[%s278_s1] sm:$0x3f] }
   0x2   :  { %205 = vmatprep.subr.msk.mxu0 %vm25_vm0, %v19_v1  ;;  %213 = vmatpush3.msk.msra.mxu1 %vm25_vm0, %v20_v2  ;;  %v17_v4 = vld [vmem:[%s279_s0] sm:$0x3f]  ;;  %v223_v6 = vmov 0   ;;  %vm199_vm3 = vcmask 259072  }
   0x3   :  { %206 = vmatpush1.msk.msra.mxu0 %vm25_vm0, %v18_v3  ;;  %99 = vmatprep.mubr.f32.mxu0 %v221_v0  ;;  %v176_v5 = vld [vmem:[%s280_s2] sm:$0x3f] }
   0x4   :  { %215 = vmatmul.mubr.msk.f32.vlgmr.msra.gmra.mrb[0].mxu1 %vm21_vm1, %v17_v4  ;;  %207 = vmatmul.mubr.msk.f32.vlgmr.msra.gmra.mrb[0].mxu0 %vm21_vm1, %v17_v4  ;;  %v185_v7 = vld [vmem:[%s281_s3] sm:$0x3f] }
   0x5   :  { %220 = vset.pattern.permute.xlu0 %v223_v6 }
   0x6   :  { %179 = vperm.xlu0 %220, %v176_v5  }
   0xa   :  { %188 = vperm.xlu0 %220, %v185_v7  }
  0x85   :  { %v180_v8 = vpop.permute.xlu0 %179 }
  0x89   :  { %v189_v15 = vpop.permute.xlu0 %188 }
  0xd7   :  { %v172_v9 = vpop.f32.mrb[0].mxu1  ;;  %v101_v10 = vpop.f32.mrb[0].mxu0 }
  0xd8   :  { %v184_v11 = vmul.f32 %v180_v8, %v172_v9  ;;  %v182_v12 = vmul.f32 %v180_v8, %v101_v10  ;;  %v103_v13 = vpop.f32.mrb[1].mxu0  ;;  %v216_v14 = vpop.f32.mrb[1].mxu1 }
  0xd9   :  { %v183_v16 = vmul.f32 %v180_v8, %v103_v13 }
  0xda   :  { %v193_v17 = vadd.f32 %v189_v15, %v184_v11  ;;  %v191_v18 = vadd.f32 %v189_v15, %v182_v12 }
  0xdb   :  { %v192_v19 = vadd.f32 %v189_v15, %v183_v16 }
  0xdc   :  { %v196_v20 = vmax.f32 %v193_v17, 0.0  ;;  %v194_v21 = vmax.f32 %v191_v18, 0.0 }
  0xdd   :  { %v195_v22 = vmax.f32 %v192_v19, 0.0 }
  0xde   :  { %197 = vst [vmem:[%s282_s4] sm:$0x3f] %v194_v21  ;;  %200 = vst.msk [vmem:[%s282_s4 + $0x10] sm:$0x3f] %vm199_vm3, %v196_v20 }
  0xdf   :  { %198 = vst [vmem:[%s282_s4 + $0x8] sm:$0x3f] %v195_v22 }

// kernel: reverse.5
= control target key start
LH: loop header
LB: loop body
LE: loop exit
PB: predicated region body
PF: predicated region fallthrough
CT: control target
= control target key end

     0   :  { %v63_v3 = vlaneseq  ;;  %v56_v7 = vld [vmem:[#allocation0 + $0x7] ss:$-1 sm:$0xff]  ;;  %v70_v9 = vld [vmem:[#allocation0 + $0x17] ss:$-1 sm:$0xff]  ;;  %s265_s0 = inlined_call_operand.vmem [shape: f32[3,2,16,7], index: 0, kind: input, shape index: {}]   ;;  %s266_s1 = inlined_call_operand.vmem [shape: f32[3,2,16,7], index: 1, kind: output, shape index: {}]  }
   0x1   :  { %v40_v0 = vld [vmem:[%s265_s0] sm:$0xff]  ;;  %v42_v1 = vld [vmem:[%s265_s0 + $0x8] sm:$0xff]  ;;  %v44_v2 = vld [vmem:[%s265_s0 + $0x10] sm:$0xff]  ;;  %v57_v10 = vrot.slane %v56_v7, 1  ;;  %v71_v11 = vrot.slane %v70_v9, 1 }
   0x2   :  { %41 = vst [vmem:[#allocation0 + $0x8] sm:$0xff] %v40_v0  ;;  %43 = vst [vmem:[#allocation0 + $0x18] sm:$0xff] %v42_v1  ;;  %v46_v4 = vld [vmem:[%s265_s0 + $0x18] sm:$0xff]  ;;  %v48_v5 = vld [vmem:[%s265_s0 + $0x20] sm:$0xff]  ;;  %v64_v8 = vshrl.u32 %v63_v3, 7 }
   0x3   :  { %45 = vst [vmem:[#allocation0 + $0x28] sm:$0xff] %v44_v2  ;;  %v50_v6 = vld [vmem:[%s265_s0 + $0x28] sm:$0xff]  ;;  %47 = vst [vmem:[#allocation0 + $0x38] sm:$0xff] %v46_v4  ;;  %v84_v12 = vld [vmem:[#allocation0 + $0x27] ss:$-1 sm:$0xff] }
   0x4   :  { %49 = vst [vmem:[#allocation0 + $0x48] sm:$0xff] %v48_v5  ;;  %51 = vst [vmem:[#allocation0 + $0x58] sm:$0xff] %v50_v6  ;;  %v98_v13 = vld [vmem:[#allocation0 + $0x37] ss:$-1 sm:$0xff]  ;;  %v85_v14 = vrot.slane %v84_v12, 1  ;;  %vm65_vm0 = vcmp.lt.s32.totalorder %v64_v8, 7 }
   0x5   :  { %v99_v15 = vrot.slane %v98_v13, 1  ;;  %v112_v16 = vld [vmem:[#allocation0 + $0x47] ss:$-1 sm:$0xff]  ;;  %58 = vst [vmem:[#allocation1] sm:$0xff] %v57_v10  ;;  %72 = vst [vmem:[#allocation1 + $0x8] sm:$0xff] %v71_v11 }
   0x6   :  { %v113_v17 = vrot.slane %v112_v16, 1  ;;  %v126_v18 = vld [vmem:[#allocation0 + $0x57] ss:$-1 sm:$0xff]  ;;  %86 = vst [vmem:[#allocation1 + $0x10] sm:$0xff] %v85_v14 }
   0x7   :  { %100 = vst [vmem:[#allocation1 + $0x18] sm:$0xff] %v99_v15  ;;  %v127_v19 = vrot.slane %v126_v18, 1 }
   0x8   :  { %114 = vst [vmem:[#allocation1 + $0x20] sm:$0xff] %v113_v17 }
   0x9   :  { %v61_v20 = vld [vmem:[#allocation0 + $0xf] ss:$-1 sm:$0xff]  ;;  %v75_v21 = vld [vmem:[#allocation0 + $0x1f] ss:$-1 sm:$0xff]  ;;  %128 = vst [vmem:[#allocation1 + $0x28] sm:$0xff] %v127_v19 }
   0xa   :  { %v89_v22 = vld [vmem:[#allocation0 + $0x2f] ss:$-1 sm:$0xff]  ;;  %v62_v23 = vrot.slane %v61_v20, 1  ;;  %v76_v24 = vrot.slane %v75_v21, 1  ;;  %v103_v26 = vld [vmem:[#allocation0 + $0x3f] ss:$-1 sm:$0xff] }
   0xb   :  { %v90_v25 = vrot.slane %v89_v22, 1  ;;  %v104_v27 = vrot.slane %v103_v26, 1  ;;  %v117_v28 = vld [vmem:[#allocation0 + $0x4f] ss:$-1 sm:$0xff]  ;;  %v131_v29 = vld [vmem:[#allocation0 + $0x5f] ss:$-1 sm:$0xff] }
   0xc   :  { %66 = vst.msk [vmem:[#allocation1] sm:$0xff] %vm65_vm0, %v62_v23  ;;  %80 = vst.msk [vmem:[#allocation1 + $0x8] sm:$0xff] %vm65_vm0, %v76_v24  ;;  %v118_v30 = vrot.slane %v117_v28, 1  ;;  %v132_v31 = vrot.slane %v131_v29, 1 }
   0xd   :  { %94 = vst.msk [vmem:[#allocation1 + $0x10] sm:$0xff] %vm65_vm0, %v90_v25  ;;  %108 = vst.msk [vmem:[#allocation1 + $0x18] sm:$0xff] %vm65_vm0, %v104_v27 }
   0xe   :  { %122 = vst.msk [vmem:[#allocation1 + $0x20] sm:$0xff] %vm65_vm0, %v118_v30  ;;  %136 = vst.msk [vmem:[#allocation1 + $0x28] sm:$0xff] %vm65_vm0, %v132_v31 }
  0x13   :  { %v174_v32 = vld [vmem:[#allocation1] sm:$0xff]  ;;  %v176_v33 = vld [vmem:[#allocation1 + $0x8] sm:$0xff] }
  0x14   :  { %v178_v34 = vld [vmem:[#allocation1 + $0x10] sm:$0xff]  ;;  %175 = vst [vmem:[%s266_s1] sm:$0xff] %v174_v32  ;;  %177 = vst [vmem:[%s266_s1 + $0x8] sm:$0xff] %v176_v33  ;;  %v180_v35 = vld [vmem:[#allocation1 + $0x18] sm:$0xff] }
  0x15   :  { %179 = vst [vmem:[%s266_s1 + $0x10] sm:$0xff] %v178_v34  ;;  %181 = vst [vmem:[%s266_s1 + $0x18] sm:$0xff] %v180_v35  ;;  %v182_v36 = vld [vmem:[#allocation1 + $0x20] sm:$0xff]  ;;  %v184_v37 = vld [vmem:[#allocation1 + $0x28] sm:$0xff] }
  0x16   :  { %183 = vst [vmem:[%s266_s1 + $0x20] sm:$0xff] %v182_v36  ;;  %185 = vst [vmem:[%s266_s1 + $0x28] sm:$0xff] %v184_v37 }

// kernel: ffc_resnet_block_forward.14
= control target key start
LH: loop header
LB: loop body
LE: loop exit
PB: predicated region body
PF: predicated region fallthrough
CT: control target
= control target key end

     0   :  { %v245_v3 = vmov 0.0   ;;  %v246_v8 = vmov 0   ;;  %vm41_vm0 = vcmask 1041408   ;;  %vm37_vm1 = vcmask 146432   ;;  %s350_s1 = inlined_call_operand.vmem [shape: f32[18,512], index: 1, kind: input, shape index: {}]   ;;  %s351_s2 = inlined_call_operand.vmem [shape: f32[6,1], index: 2, kind: input, shape index: {}]   ;;  %s352_s0 = inlined_call_operand.vmem [shape: f32[6,18], index: 0, kind: input, shape index: {}]   ;;  %s353_s3 = inlined_call_operand.vmem [shape: f32[6,1], index: 3, kind: input, shape index: {}]   ;;  %s354_s4 = inlined_call_operand.vmem [shape: f32[6,512], index: 4, kind: input, shape index: {}]   ;;  %s355_s5 = inlined_call_operand.vmem [shape: f32[6,512], index: 5, kind: output, shape index: {}]  }
   0x1   :  { %v22_v0 = vld [vmem:[%s350_s1 + $0x8] sm:$0xff]  ;;  %v24_v2 = vld [vmem:[%s350_s1 + $0x18] sm:$0xff]  ;;  %118 = vmatprep.mubr.f32.mxu0 %v245_v3  ;;  %189 = vmatprep.mubr.f32.mxu1 %v245_v3  ;;  %v21_v6 = vld [vmem:[%s350_s1] sm:$0xff] }
   0x2   :  { %v26_v1 = vld [vmem:[%s350_s1 + $0x28] sm:$0xff]  ;;  %v28_v5 = vld [vmem:[%s350_s1 + $0x38] sm:$0xff]  ;;  %v25_v7 = vld [vmem:[%s350_s1 + $0x20] sm:$0xff]  ;;  %244 = vset.pattern.permute.xlu0 %v246_v8 }
   0x3   :  { %v234_v4 = vpack.c.bf16 %v26_v1, %v22_v0  ;;  %v238_v9 = vpack.c.bf16 %v28_v5, %v24_v2  ;;  %v236_v10 = vpack.c.bf16 %v25_v7, %v21_v6  ;;  %v23_v11 = vld [vmem:[%s350_s1 + $0x10] sm:$0xff]  ;;  %v30_v13 = vld [vmem:[%s350_s1 + $0x48] sm:$0x3]  ;;  %v32_v15 = vld [vmem:[%s350_s1 + $0x58] sm:$0x3] }
   0x4   :  { %v27_v12 = vld [vmem:[%s350_s1 + $0x30] sm:$0xff]  ;;  %v196_v16 = vld [vmem:[%s351_s2] sm:$0x3f]  ;;  %v34_v24 = vld [vmem:[%s354_s4 + $0x8] sm:$0x3f] }
   0x5   :  { %235 = vmatprep.subr.bf16.mxu0 %v234_v4  ;;  %v240_v14 = vpack.c.bf16 %v27_v12, %v23_v11  ;;  %239 = vmatprep.subr.bf16.mxu1 %v238_v9  ;;  %v29_v17 = vld [vmem:[%s350_s1 + $0x40] sm:$0x3]  ;;  %v31_v18 = vld [vmem:[%s350_s1 + $0x50] sm:$0x3]  ;;  %v36_v26 = vld [vmem:[%s354_s4 + $0x18] sm:$0x3f] }
   0x6   :  { %237 = vmatpush1.bf16.msra.mxu0 %v236_v10  ;;  %v20_v19 = vld [vmem:[%s352_s0] sm:$0x3f]  ;;  %199 = vperm.xlu0 %244, %v196_v16   ;;  %v35_v23 = vld [vmem:[%s354_s4 + $0x10] sm:$0x3f] }
   0x7   :  { %241 = vmatpush1.bf16.msra.mxu1 %v240_v14  ;;  %228 = vmatprep.subr.msk.mxu0 %vm41_vm0, %v30_v13  ;;  %v206_v20 = vld [vmem:[%s353_s3] sm:$0x3f] }
   0x8   :  { %231 = vmatprep.subr.msk.mxu1 %vm41_vm0, %v32_v15  ;;  %v33_v22 = vld [vmem:[%s354_s4] sm:$0x3f] }
   0xa   :  { %229 = vmatpush1.msk.msra.mxu0 %vm41_vm0, %v29_v17  ;;  %209 = vperm.xlu0 %244, %v206_v20  }
   0xb   :  { %232 = vmatpush1.msk.msra.mxu1 %vm41_vm0, %v31_v18  ;;  %230 = vmatmul.mubr.msk.f32.vlgmr.msra.gmra.mrb[0].mxu0 %vm37_vm1, %v20_v19 }
   0xc   :  { %233 = vmatmul.mubr.msk.f32.vlgmr.msra.gmra.mrb[0].mxu1 %vm37_vm1, %v20_v19 }
  0x85   :  { %v200_v21 = vpop.permute.xlu0 %199 }
  0x89   :  { %v210_v36 = vpop.permute.xlu0 %209 }
  0xde   :  { %v120_v25 = vpop.f32.mrb[0].mxu0 }
  0xdf   :  { %v121_v27 = vadd.f32 %v120_v25, %v33_v22  ;;  %v191_v28 = vpop.f32.mrb[0].mxu1  ;;  %v122_v29 = vpop.f32.mrb[1].mxu0 }
  0xe0   :  { %v192_v30 = vadd.f32 %v191_v28, %v35_v23  ;;  %v123_v31 = vadd.f32 %v122_v29, %v34_v24  ;;  %v193_v32 = vpop.f32.mrb[1].mxu1 }
  0xe1   :  { %v202_v33 = vmul.f32 %v200_v21, %v121_v27  ;;  %v194_v34 = vadd.f32 %v193_v32, %v36_v26 }
  0xe2   :  { %v204_v35 = vmul.f32 %v200_v21, %v192_v30  ;;  %v203_v37 = vmul.f32 %v200_v21, %v123_v31 }
  0xe3   :  { %v212_v38 = vadd.f32 %v210_v36, %v202_v33  ;;  %v205_v39 = vmul.f32 %v200_v21, %v194_v34 }
  0xe4   :  { %v214_v40 = vadd.f32 %v210_v36, %v204_v35  ;;  %v213_v41 = vadd.f32 %v210_v36, %v203_v37 }
  0xe5   :  { %v216_v42 = vmax.f32 %v212_v38, 0.0  ;;  %v215_v43 = vadd.f32 %v210_v36, %v205_v39 }
  0xe6   :  { %v218_v44 = vmax.f32 %v214_v40, 0.0  ;;  %v217_v45 = vmax.f32 %v213_v41, 0.0 }
  0xe7   :  { %220 = vst [vmem:[%s355_s5] sm:$0x3f] %v216_v42  ;;  %v219_v46 = vmax.f32 %v215_v43, 0.0 }
  0xe8   :  { %222 = vst [vmem:[%s355_s5 + $0x10] sm:$0x3f] %v218_v44  ;;  %221 = vst [vmem:[%s355_s5 + $0x8] sm:$0x3f] %v217_v45 }
  0xe9   :  { %223 = vst [vmem:[%s355_s5 + $0x18] sm:$0x3f] %v219_v46 }

// kernel: ffc_resnet_block_forward.13
= control target key start
LH: loop header
LB: loop body
LE: loop exit
PB: predicated region body
PF: predicated region fallthrough
CT: control target
= control target key end

     0   :  { %vm22_vm0 = vcmask 1042432   ;;  %v190_v2 = vmov 0.0   ;;  %vm18_vm1 = vcmask 23552   ;;  %s227_s1 = inlined_call_operand.vmem [shape: f32[3,512], index: 1, kind: input, shape index: {}]   ;;  %s228_s0 = inlined_call_operand.vmem [shape: f32[6,3], index: 0, kind: input, shape index: {}]   ;;  %s229_s2 = inlined_call_operand.vmem [shape: f32[6,512], index: 2, kind: output, shape index: {}]  }
   0x1   :  { %v12_v0 = vld [vmem:[%s227_s1] sm:$0x77]  ;;  %v13_v1 = vld [vmem:[%s227_s1 + $0x8] sm:$0x77]  ;;  %95 = vmatprep.mubr.f32.mxu0 %v190_v2  ;;  %166 = vmatprep.mubr.f32.mxu1 %v190_v2 }
   0x2   :  { %v16_v3 = vcombine.high %v12_v0, %v12_v0  ;;  %v17_v4 = vcombine.high %v13_v1, %v13_v1  ;;  %v11_v5 = vld [vmem:[%s228_s0] sm:$0x3f] }
   0x4   :  { %181 = vmatprep.subr.msk.mxu0 %vm22_vm0, %v16_v3  ;;  %184 = vmatprep.subr.msk.mxu1 %vm22_vm0, %v17_v4 }
   0x5   :  { %182 = vmatpush1.msk.msra.mxu0 %vm22_vm0, %v12_v0  ;;  %185 = vmatpush1.msk.msra.mxu1 %vm22_vm0, %v13_v1 }
   0x6   :  { %183 = vmatmul.mubr.msk.f32.vlgmr.msra.gmra.mrb[0].mxu0 %vm18_vm1, %v11_v5  ;;  %186 = vmatmul.mubr.msk.f32.vlgmr.msra.gmra.mrb[0].mxu1 %vm18_vm1, %v11_v5 }
  0xd9   :  { %v97_v6 = vpop.f32.mrb[0].mxu0  ;;  %v168_v7 = vpop.f32.mrb[0].mxu1 }
  0xda   :  { %173 = vst [vmem:[%s229_s2] sm:$0x3f] %v97_v6  ;;  %175 = vst [vmem:[%s229_s2 + $0x10] sm:$0x3f] %v168_v7  ;;  %v99_v8 = vpop.f32.mrb[1].mxu0  ;;  %v170_v9 = vpop.f32.mrb[1].mxu1 }
  0xdb   :  { %174 = vst [vmem:[%s229_s2 + $0x8] sm:$0x3f] %v99_v8  ;;  %176 = vst [vmem:[%s229_s2 + $0x18] sm:$0x3f] %v170_v9 }

// kernel: ffc_resnet_block_forward.10
= control target key start
LH: loop header
LB: loop body
LE: loop exit
PB: predicated region body
PF: predicated region fallthrough
CT: control target
= control target key end

     0   :  { %v289_v3 = vmov 0.0   ;;  %v290_v8 = vmov 0   ;;  %vm54_vm0 = vcmask 588800   ;;  %v291_v58 = vmov 1983009808   ;;  %s437_s1 = inlined_call_operand.vmem [shape: f32[72,512], index: 1, kind: input, shape index: {}]   ;;  %s438_s2 = inlined_call_operand.vmem [shape: f32[2,1], index: 2, kind: input, shape index: {}]   ;;  %s439_s3 = inlined_call_operand.vmem [shape: f32[2,1], index: 3, kind: input, shape index: {}]   ;;  %s440_s0 = inlined_call_operand.vmem [shape: f32[2,72], index: 0, kind: input, shape index: {}]   ;;  %s441_s4 = inlined_call_operand.vmem [shape: f32[2,512], index: 4, kind: output, shape index: {}]  }
   0x1   :  { %v19_v0 = vld [vmem:[%s437_s1 + $0x8] sm:$0xff]  ;;  %v21_v2 = vld [vmem:[%s437_s1 + $0x18] sm:$0xff]  ;;  %122 = vmatprep.mubr.f32.mxu0 %v289_v3  ;;  %193 = vmatprep.mubr.f32.mxu1 %v289_v3  ;;  %v18_v6 = vld [vmem:[%s437_s1] sm:$0xff]  ;;  %v231_v59 = vunpack.c.l.s4 %v291_v58  ;;  %v233_v60 = vlaneseq }
   0x2   :  { %v23_v1 = vld [vmem:[%s437_s1 + $0x28] sm:$0xff]  ;;  %v25_v5 = vld [vmem:[%s437_s1 + $0x38] sm:$0xff]  ;;  %v22_v7 = vld [vmem:[%s437_s1 + $0x20] sm:$0xff]  ;;  %288 = vset.pattern.permute.xlu0 %v290_v8 }
   0x3   :  { %v253_v4 = vpack.c.bf16 %v23_v1, %v19_v0  ;;  %v269_v9 = vpack.c.bf16 %v25_v5, %v21_v2  ;;  %v255_v10 = vpack.c.bf16 %v22_v7, %v18_v6  ;;  %v20_v11 = vld [vmem:[%s437_s1 + $0x10] sm:$0xff]  ;;  %v27_v13 = vld [vmem:[%s437_s1 + $0x48] sm:$0xff]  ;;  %v29_v16 = vld [vmem:[%s437_s1 + $0x58] sm:$0xff]  ;;  %v234_v5 = vshrl.u32 %v233_v60, 7 }
   0x4   :  { %v24_v12 = vld [vmem:[%s437_s1 + $0x30] sm:$0xff]  ;;  %v31_v15 = vld [vmem:[%s437_s1 + $0x68] sm:$0xff]  ;;  %v33_v17 = vld [vmem:[%s437_s1 + $0x78] sm:$0xff] }
   0x5   :  { %254 = vmatprep.subr.bf16.mxu0 %v253_v4  ;;  %v271_v14 = vpack.c.bf16 %v24_v12, %v20_v11  ;;  %270 = vmatprep.subr.bf16.mxu1 %v269_v9  ;;  %v257_v18 = vpack.c.bf16 %v31_v15, %v27_v13  ;;  %v273_v19 = vpack.c.bf16 %v33_v17, %v29_v16  ;;  %v26_v20 = vld [vmem:[%s437_s1 + $0x40] sm:$0xff]  ;;  %v28_v22 = vld [vmem:[%s437_s1 + $0x50] sm:$0xff]  ;;  %v35_v25 = vld [vmem:[%s437_s1 + $0x88] sm:$0xff]  ;;  %v232_v4 = vunpack.c.0.s8 %v231_v59 }
   0x6   :  { %256 = vmatpush1.bf16.msra.mxu0 %v255_v10  ;;  %v30_v21 = vld [vmem:[%s437_s1 + $0x60] sm:$0xff]  ;;  %v32_v24 = vld [vmem:[%s437_s1 + $0x70] sm:$0xff]  ;;  %v39_v26 = vld [vmem:[%s437_s1 + $0xa8] sm:$0xff] }
   0x7   :  { %272 = vmatpush1.bf16.msra.mxu1 %v271_v14  ;;  %v259_v23 = vpack.c.bf16 %v30_v21, %v26_v20  ;;  %258 = vmatprep.subr.bf16.mxu0 %v257_v18  ;;  %v275_v27 = vpack.c.bf16 %v32_v24, %v28_v22  ;;  %v261_v28 = vpack.c.bf16 %v39_v26, %v35_v25  ;;  %v37_v29 = vld [vmem:[%s437_s1 + $0x98] sm:$0xff]  ;;  %v34_v31 = vld [vmem:[%s437_s1 + $0x80] sm:$0xff]  ;;  %v36_v34 = vld [vmem:[%s437_s1 + $0x90] sm:$0xff] }
   0x8   :  { %274 = vmatprep.subr.bf16.mxu1 %v273_v19  ;;  %v41_v30 = vld [vmem:[%s437_s1 + $0xb8] sm:$0xff]  ;;  %v38_v33 = vld [vmem:[%s437_s1 + $0xa0] sm:$0xff]  ;;  %v40_v35 = vld [vmem:[%s437_s1 + $0xb0] sm:$0xff]  ;;  %v235_v15 = vsub.s32 %v232_v4, %v234_v5 }
   0x9   :  { %v277_v32 = vpack.c.bf16 %v41_v30, %v37_v29  ;;  %v263_v36 = vpack.c.bf16 %v38_v33, %v34_v31  ;;  %v43_v37 = vld [vmem:[%s437_s1 + $0xc8] sm:$0xff]  ;;  %v45_v39 = vld [vmem:[%s437_s1 + $0xd8] sm:$0xff]  ;;  %v279_v40 = vpack.c.bf16 %v40_v35, %v36_v34  ;;  %v42_v43 = vld [vmem:[%s437_s1 + $0xc0] sm:$0xff] }
   0xa   :  { %260 = vmatpush1.bf16.msra.mxu0 %v259_v23  ;;  %v47_v38 = vld [vmem:[%s437_s1 + $0xe8] sm:$0xff]  ;;  %v49_v42 = vld [vmem:[%s437_s1 + $0xf8] sm:$0xff]  ;;  %v46_v44 = vld [vmem:[%s437_s1 + $0xe0] sm:$0xff] }
   0xb   :  { %276 = vmatpush1.bf16.msra.mxu1 %v275_v27  ;;  %262 = vmatprep.subr.bf16.mxu0 %v261_v28  ;;  %v265_v41 = vpack.c.bf16 %v47_v38, %v43_v37  ;;  %v281_v45 = vpack.c.bf16 %v49_v42, %v45_v39  ;;  %v44_v46 = vld [vmem:[%s437_s1 + $0xd0] sm:$0xff]  ;;  %v267_v48 = vpack.c.bf16 %v46_v44, %v42_v43  ;;  %v200_v49 = vld [vmem:[%s438_s2] sm:$0x3]  ;;  %v51_v51 = vld [vmem:[%s437_s1 + $0x108] sm:$0xff] }
   0xc   :  { %278 = vmatprep.subr.bf16.mxu1 %v277_v32  ;;  %v48_v47 = vld [vmem:[%s437_s1 + $0xf0] sm:$0xff]  ;;  %203 = vperm.xlu0 %288, %v200_v49   ;;  %v53_v52 = vld [vmem:[%s437_s1 + $0x118] sm:$0xff]  ;;  %v210_v53 = vld [vmem:[%s439_s3] sm:$0x3] }
   0xd   :  { %v283_v50 = vpack.c.bf16 %v48_v47, %v44_v46  ;;  %v50_v54 = vld [vmem:[%s437_s1 + $0x100] sm:$0xff]  ;;  %v52_v55 = vld [vmem:[%s437_s1 + $0x110] sm:$0xff] }
   0xe   :  { %264 = vmatpush1.bf16.msra.mxu0 %v263_v36  ;;  %v17_v56 = vld [vmem:[%s440_s0] sm:$0x3] }
   0xf   :  { %280 = vmatpush1.bf16.msra.mxu1 %v279_v40  ;;  %266 = vmatprep.subr.bf16.mxu0 %v265_v41 }
  0x10   :  { %282 = vmatprep.subr.bf16.mxu1 %v281_v45  ;;  %213 = vperm.xlu0 %288, %v210_v53  }
  0x12   :  { %268 = vmatpush1.bf16.msra.mxu0 %v267_v48 }
  0x13   :  { %284 = vmatpush1.bf16.msra.mxu1 %v283_v50  ;;  %74 = vmatprep.subr.mxu0 %v51_v51 }
  0x14   :  { %145 = vmatprep.subr.mxu1 %v53_v52 }
  0x16   :  { %75 = vmatpush1.msra.mxu0 %v50_v54 }
  0x17   :  { %146 = vmatpush1.msra.mxu1 %v52_v55  ;;  %251 = vmatmul.mubr.msk.f32.vlgmr.msra.gmra.mrb[0].mxu0 %vm54_vm0, %v17_v56 }
  0x18   :  { %252 = vmatmul.mubr.msk.f32.vlgmr.msra.gmra.mrb[0].mxu1 %vm54_vm0, %v17_v56 }
  0x8b   :  { %v204_v57 = vpop.permute.xlu0 %203 }
  0x8f   :  { %v214_v1 = vpop.permute.xlu0 %213 }
  0xea   :  { %v124_v61 = vpop.f32.mrb[0].mxu0 }
  0xeb   :  { %v206_v62 = vmul.f32 %v204_v57, %v124_v61  ;;  %v195_v63 = vpop.f32.mrb[0].mxu1  ;;  %v126_v0 = vpop.f32.mrb[1].mxu0 }
  0xec   :  { %v208_v2 = vmul.f32 %v204_v57, %v195_v63  ;;  %v207_v3 = vmul.f32 %v204_v57, %v126_v0  ;;  %v197_v6 = vpop.f32.mrb[1].mxu1 }
  0xed   :  { %v216_v7 = vadd.f32 %v214_v1, %v206_v62  ;;  %v209_v8 = vmul.f32 %v204_v57, %v197_v6 }
  0xee   :  { %v218_v9 = vadd.f32 %v214_v1, %v208_v2  ;;  %v217_v10 = vadd.f32 %v214_v1, %v207_v3 }
  0xef   :  { %v220_v11 = vmax.f32 %v216_v7, 0.0  ;;  %v219_v12 = vadd.f32 %v214_v1, %v209_v8 }
  0xf0   :  { %v222_v13 = vmax.f32 %v218_v9, 0.0  ;;  %v221_v14 = vmax.f32 %v217_v10, 0.0 }
  0xf1   :  { %v223_v16 = vmax.f32 %v219_v12, 0.0 }
  0xf2   :  { %v228_v17 = vcombine.low %v220_v11, %v221_v14 }
  0xf3   :  { %v229_v18 = vcombine.low %v222_v13, %v223_v16 }
  0xf4   :  { %v236_v19 = vrot.slane %v228_v17, %v235_v15 }
  0xf5   :  { %v243_v20 = vrot.slane %v229_v18, %v235_v15 }
  0xf7   :  { %v244_v21 = vcombine.low %v236_v19, %v243_v20 }
  0xf9   :  { %246 = vst [vmem:[%s441_s4] sm:$0xff] %v244_v21 }

// kernel: ffc_resnet_block_forward.15
= control target key start
LH: loop header
LB: loop body
LE: loop exit
PB: predicated region body
PF: predicated region fallthrough
CT: control target
= control target key end

     0   :  { %v320_v3 = vmov 0.0   ;;  %v321_v8 = vmov 0   ;;  %vm57_vm0 = vcmask 588800   ;;  %v322_v57 = vmov 1983009808   ;;  %s476_s1 = inlined_call_operand.vmem [shape: f32[72,512], index: 1, kind: input, shape index: {}]   ;;  %s477_s2 = inlined_call_operand.vmem [shape: f32[2,1], index: 2, kind: input, shape index: {}]   ;;  %s478_s3 = inlined_call_operand.vmem [shape: f32[2,1], index: 3, kind: input, shape index: {}]   ;;  %s479_s0 = inlined_call_operand.vmem [shape: f32[2,72], index: 0, kind: input, shape index: {}]   ;;  %s480_s4 = inlined_call_operand.vmem [shape: f32[2,512], index: 4, kind: input, shape index: {}]   ;;  %s481_s5 = inlined_call_operand.vmem [shape: f32[2,512], index: 5, kind: output, shape index: {}]  }
   0x1   :  { %v22_v0 = vld [vmem:[%s476_s1 + $0x8] sm:$0xff]  ;;  %v24_v2 = vld [vmem:[%s476_s1 + $0x18] sm:$0xff]  ;;  %125 = vmatprep.mubr.f32.mxu0 %v320_v3  ;;  %196 = vmatprep.mubr.f32.mxu1 %v320_v3  ;;  %v21_v6 = vld [vmem:[%s476_s1] sm:$0xff]  ;;  %v231_v58 = vunpack.c.l.s4 %v322_v57  ;;  %v233_v59 = vlaneseq }
   0x2   :  { %v26_v1 = vld [vmem:[%s476_s1 + $0x28] sm:$0xff]  ;;  %v28_v5 = vld [vmem:[%s476_s1 + $0x38] sm:$0xff]  ;;  %v25_v7 = vld [vmem:[%s476_s1 + $0x20] sm:$0xff]  ;;  %318 = vset.pattern.permute.xlu0 %v321_v8 }
   0x3   :  { %v283_v4 = vpack.c.bf16 %v26_v1, %v22_v0  ;;  %v299_v9 = vpack.c.bf16 %v28_v5, %v24_v2  ;;  %v285_v10 = vpack.c.bf16 %v25_v7, %v21_v6  ;;  %v23_v11 = vld [vmem:[%s476_s1 + $0x10] sm:$0xff]  ;;  %v30_v13 = vld [vmem:[%s476_s1 + $0x48] sm:$0xff]  ;;  %v32_v16 = vld [vmem:[%s476_s1 + $0x58] sm:$0xff]  ;;  %v232_v60 = vunpack.c.0.s8 %v231_v58 }
   0x4   :  { %v27_v12 = vld [vmem:[%s476_s1 + $0x30] sm:$0xff]  ;;  %v34_v15 = vld [vmem:[%s476_s1 + $0x68] sm:$0xff]  ;;  %v36_v17 = vld [vmem:[%s476_s1 + $0x78] sm:$0xff]  ;;  %v234_v61 = vshrl.u32 %v233_v59, 7 }
   0x5   :  { %284 = vmatprep.subr.bf16.mxu0 %v283_v4  ;;  %v301_v14 = vpack.c.bf16 %v27_v12, %v23_v11  ;;  %300 = vmatprep.subr.bf16.mxu1 %v299_v9  ;;  %v287_v18 = vpack.c.bf16 %v34_v15, %v30_v13  ;;  %v303_v19 = vpack.c.bf16 %v36_v17, %v32_v16  ;;  %v29_v20 = vld [vmem:[%s476_s1 + $0x40] sm:$0xff]  ;;  %v31_v22 = vld [vmem:[%s476_s1 + $0x50] sm:$0xff]  ;;  %v38_v25 = vld [vmem:[%s476_s1 + $0x88] sm:$0xff] }
   0x6   :  { %286 = vmatpush1.bf16.msra.mxu0 %v285_v10  ;;  %v33_v21 = vld [vmem:[%s476_s1 + $0x60] sm:$0xff]  ;;  %v35_v24 = vld [vmem:[%s476_s1 + $0x70] sm:$0xff]  ;;  %v42_v26 = vld [vmem:[%s476_s1 + $0xa8] sm:$0xff]  ;;  %v235_v0 = vsub.s32 %v232_v60, %v234_v61 }
   0x7   :  { %302 = vmatpush1.bf16.msra.mxu1 %v301_v14  ;;  %v289_v23 = vpack.c.bf16 %v33_v21, %v29_v20  ;;  %288 = vmatprep.subr.bf16.mxu0 %v287_v18  ;;  %v305_v27 = vpack.c.bf16 %v35_v24, %v31_v22  ;;  %v291_v28 = vpack.c.bf16 %v42_v26, %v38_v25  ;;  %v40_v29 = vld [vmem:[%s476_s1 + $0x98] sm:$0xff]  ;;  %v37_v31 = vld [vmem:[%s476_s1 + $0x80] sm:$0xff]  ;;  %v39_v34 = vld [vmem:[%s476_s1 + $0x90] sm:$0xff] }
   0x8   :  { %304 = vmatprep.subr.bf16.mxu1 %v303_v19  ;;  %v44_v30 = vld [vmem:[%s476_s1 + $0xb8] sm:$0xff]  ;;  %v41_v33 = vld [vmem:[%s476_s1 + $0xa0] sm:$0xff]  ;;  %v43_v35 = vld [vmem:[%s476_s1 + $0xb0] sm:$0xff] }
   0x9   :  { %v307_v32 = vpack.c.bf16 %v44_v30, %v40_v29  ;;  %v293_v36 = vpack.c.bf16 %v41_v33, %v37_v31  ;;  %v46_v37 = vld [vmem:[%s476_s1 + $0xc8] sm:$0xff]  ;;  %v48_v39 = vld [vmem:[%s476_s1 + $0xd8] sm:$0xff]  ;;  %v309_v40 = vpack.c.bf16 %v43_v35, %v39_v34  ;;  %v45_v43 = vld [vmem:[%s476_s1 + $0xc0] sm:$0xff] }
   0xa   :  { %290 = vmatpush1.bf16.msra.mxu0 %v289_v23  ;;  %v50_v38 = vld [vmem:[%s476_s1 + $0xe8] sm:$0xff]  ;;  %v52_v42 = vld [vmem:[%s476_s1 + $0xf8] sm:$0xff]  ;;  %v49_v44 = vld [vmem:[%s476_s1 + $0xe0] sm:$0xff] }
   0xb   :  { %306 = vmatpush1.bf16.msra.mxu1 %v305_v27  ;;  %292 = vmatprep.subr.bf16.mxu0 %v291_v28  ;;  %v295_v41 = vpack.c.bf16 %v50_v38, %v46_v37  ;;  %v311_v45 = vpack.c.bf16 %v52_v42, %v48_v39  ;;  %v47_v46 = vld [vmem:[%s476_s1 + $0xd0] sm:$0xff]  ;;  %v297_v48 = vpack.c.bf16 %v49_v44, %v45_v43  ;;  %v203_v49 = vld [vmem:[%s477_s2] sm:$0x3]  ;;  %v54_v51 = vld [vmem:[%s476_s1 + $0x108] sm:$0xff] }
   0xc   :  { %308 = vmatprep.subr.bf16.mxu1 %v307_v32  ;;  %v51_v47 = vld [vmem:[%s476_s1 + $0xf0] sm:$0xff]  ;;  %206 = vperm.xlu0 %318, %v203_v49   ;;  %v56_v52 = vld [vmem:[%s476_s1 + $0x118] sm:$0xff]  ;;  %v213_v53 = vld [vmem:[%s478_s3] sm:$0x3] }
   0xd   :  { %v313_v50 = vpack.c.bf16 %v51_v47, %v47_v46  ;;  %v53_v54 = vld [vmem:[%s476_s1 + $0x100] sm:$0xff]  ;;  %v55_v55 = vld [vmem:[%s476_s1 + $0x110] sm:$0xff] }
   0xe   :  { %294 = vmatpush1.bf16.msra.mxu0 %v293_v36  ;;  %v20_v56 = vld [vmem:[%s479_s0] sm:$0x3] }
   0xf   :  { %310 = vmatpush1.bf16.msra.mxu1 %v309_v40  ;;  %296 = vmatprep.subr.bf16.mxu0 %v295_v41  ;;  %v227_v62 = vld [vmem:[%s480_s4] sm:$0xff] }
  0x10   :  { %312 = vmatprep.subr.bf16.mxu1 %v311_v45  ;;  %216 = vperm.xlu0 %318, %v213_v53   ;;  %v229_v1 = vcombine.high %v227_v62, %v227_v62  ;;  %v236_v3 = vrot.slane %v227_v62, %v235_v0 }
  0x12   :  { %298 = vmatpush1.bf16.msra.mxu0 %v297_v48  ;;  %v243_v6 = vrot.slane %v229_v1, %v235_v0  ;;  %v244_v16 = vcombine.high %v236_v3, %v236_v3 }
  0x13   :  { %314 = vmatpush1.bf16.msra.mxu1 %v313_v50  ;;  %77 = vmatprep.subr.mxu0 %v54_v51 }
  0x14   :  { %148 = vmatprep.subr.mxu1 %v56_v52  ;;  %v245_v19 = vcombine.high %v243_v6, %v243_v6 }
  0x16   :  { %78 = vmatpush1.msra.mxu0 %v53_v54 }
  0x17   :  { %149 = vmatpush1.msra.mxu1 %v55_v55  ;;  %281 = vmatmul.mubr.msk.f32.vlgmr.msra.gmra.mrb[0].mxu0 %vm57_vm0, %v20_v56 }
  0x18   :  { %282 = vmatmul.mubr.msk.f32.vlgmr.msra.gmra.mrb[0].mxu1 %vm57_vm0, %v20_v56 }
  0x8b   :  { %v207_v63 = vpop.permute.xlu0 %206 }
  0x8f   :  { %v217_v8 = vpop.permute.xlu0 %216 }
  0xea   :  { %v127_v2 = vpop.f32.mrb[0].mxu0 }
  0xeb   :  { %v209_v4 = vmul.f32 %v207_v63, %v127_v2  ;;  %v198_v5 = vpop.f32.mrb[0].mxu1  ;;  %v129_v7 = vpop.f32.mrb[1].mxu0 }
  0xec   :  { %v211_v9 = vmul.f32 %v207_v63, %v198_v5  ;;  %v210_v10 = vmul.f32 %v207_v63, %v129_v7  ;;  %v200_v11 = vpop.f32.mrb[1].mxu1 }
  0xed   :  { %v219_v12 = vadd.f32 %v217_v8, %v209_v4  ;;  %v212_v13 = vmul.f32 %v207_v63, %v200_v11 }
  0xee   :  { %v221_v14 = vadd.f32 %v217_v8, %v211_v9  ;;  %v220_v15 = vadd.f32 %v217_v8, %v210_v10 }
  0xef   :  { %v223_v17 = vmax.f32 %v219_v12, 0.0  ;;  %v222_v18 = vadd.f32 %v217_v8, %v212_v13 }
  0xf0   :  { %v225_v20 = vmax.f32 %v221_v14, 0.0  ;;  %v224_v21 = vmax.f32 %v220_v15, 0.0 }
  0xf1   :  { %v250_v22 = vadd.f32 %v236_v3, %v223_v17  ;;  %v226_v23 = vmax.f32 %v222_v18, 0.0 }
  0xf2   :  { %v252_v24 = vadd.f32 %v243_v6, %v225_v20  ;;  %v251_v25 = vadd.f32 %v244_v16, %v224_v21 }
  0xf3   :  { %v253_v26 = vadd.f32 %v245_v19, %v226_v23 }
  0xf4   :  { %v258_v27 = vcombine.low %v250_v22, %v251_v25 }
  0xf5   :  { %v259_v28 = vcombine.low %v252_v24, %v253_v26 }
  0xf6   :  { %v266_v29 = vrot.slane %v258_v27, %v235_v0 }
  0xf7   :  { %v273_v30 = vrot.slane %v259_v28, %v235_v0 }
  0xf9   :  { %v274_v31 = vcombine.low %v266_v29, %v273_v30 }
  0xfb   :  { %276 = vst [vmem:[%s481_s5] sm:$0xff] %v274_v31 }

// kernel: ffc_resnet_block_forward.19
= control target key start
LH: loop header
LB: loop body
LE: loop exit
PB: predicated region body
PF: predicated region fallthrough
CT: control target
= control target key end

     0   :  { %v256_v3 = vmov 0.0   ;;  %v257_v8 = vmov 0   ;;  %vm44_vm0 = vcmask 1041408   ;;  %vm40_vm1 = vcmask 146432   ;;  %s378_s1 = inlined_call_operand.vmem [shape: f32[18,512], index: 1, kind: input, shape index: {}]   ;;  %s379_s2 = inlined_call_operand.vmem [shape: f32[6,1], index: 2, kind: input, shape index: {}]   ;;  %s380_s0 = inlined_call_operand.vmem [shape: f32[6,18], index: 0, kind: input, shape index: {}]   ;;  %s381_s3 = inlined_call_operand.vmem [shape: f32[6,1], index: 3, kind: input, shape index: {}]   ;;  %s382_s4 = inlined_call_operand.vmem [shape: f32[6,512], index: 4, kind: input, shape index: {}]   ;;  %s383_s5 = inlined_call_operand.vmem [shape: f32[6,512], index: 5, kind: input, shape index: {}]   ;;  %s384_s6 = inlined_call_operand.vmem [shape: f32[6,512], index: 6, kind: output, shape index: {}]  }
   0x1   :  { %v25_v0 = vld [vmem:[%s378_s1 + $0x8] sm:$0xff]  ;;  %v27_v2 = vld [vmem:[%s378_s1 + $0x18] sm:$0xff]  ;;  %121 = vmatprep.mubr.f32.mxu0 %v256_v3  ;;  %192 = vmatprep.mubr.f32.mxu1 %v256_v3  ;;  %v24_v6 = vld [vmem:[%s378_s1] sm:$0xff] }
   0x2   :  { %v29_v1 = vld [vmem:[%s378_s1 + $0x28] sm:$0xff]  ;;  %v31_v5 = vld [vmem:[%s378_s1 + $0x38] sm:$0xff]  ;;  %v28_v7 = vld [vmem:[%s378_s1 + $0x20] sm:$0xff]  ;;  %255 = vset.pattern.permute.xlu0 %v257_v8 }
   0x3   :  { %v245_v4 = vpack.c.bf16 %v29_v1, %v25_v0  ;;  %v249_v9 = vpack.c.bf16 %v31_v5, %v27_v2  ;;  %v247_v10 = vpack.c.bf16 %v28_v7, %v24_v6  ;;  %v26_v11 = vld [vmem:[%s378_s1 + $0x10] sm:$0xff]  ;;  %v33_v13 = vld [vmem:[%s378_s1 + $0x48] sm:$0x3]  ;;  %v35_v15 = vld [vmem:[%s378_s1 + $0x58] sm:$0x3] }
   0x4   :  { %v30_v12 = vld [vmem:[%s378_s1 + $0x30] sm:$0xff]  ;;  %v199_v16 = vld [vmem:[%s379_s2] sm:$0x3f]  ;;  %v37_v24 = vld [vmem:[%s382_s4 + $0x8] sm:$0x3f] }
   0x5   :  { %246 = vmatprep.subr.bf16.mxu0 %v245_v4  ;;  %v251_v14 = vpack.c.bf16 %v30_v12, %v26_v11  ;;  %250 = vmatprep.subr.bf16.mxu1 %v249_v9  ;;  %v32_v17 = vld [vmem:[%s378_s1 + $0x40] sm:$0x3]  ;;  %v34_v18 = vld [vmem:[%s378_s1 + $0x50] sm:$0x3]  ;;  %v39_v26 = vld [vmem:[%s382_s4 + $0x18] sm:$0x3f] }
   0x6   :  { %248 = vmatpush1.bf16.msra.mxu0 %v247_v10  ;;  %v23_v19 = vld [vmem:[%s380_s0] sm:$0x3f]  ;;  %202 = vperm.xlu0 %255, %v199_v16   ;;  %v38_v23 = vld [vmem:[%s382_s4 + $0x10] sm:$0x3f]  ;;  %v224_v45 = vld [vmem:[%s383_s5 + $0x8] sm:$0x3f] }
   0x7   :  { %252 = vmatpush1.bf16.msra.mxu1 %v251_v14  ;;  %239 = vmatprep.subr.msk.mxu0 %vm44_vm0, %v33_v13  ;;  %v209_v20 = vld [vmem:[%s381_s3] sm:$0x3f]  ;;  %v225_v43 = vld [vmem:[%s383_s5 + $0x10] sm:$0x3f]  ;;  %v226_v49 = vld [vmem:[%s383_s5 + $0x18] sm:$0x3f] }
   0x8   :  { %242 = vmatprep.subr.msk.mxu1 %vm44_vm0, %v35_v15  ;;  %v36_v22 = vld [vmem:[%s382_s4] sm:$0x3f] }
   0x9   :  { %v223_v40 = vld [vmem:[%s383_s5] sm:$0x3f] }
   0xa   :  { %240 = vmatpush1.msk.msra.mxu0 %vm44_vm0, %v32_v17  ;;  %212 = vperm.xlu0 %255, %v209_v20  }
   0xb   :  { %243 = vmatpush1.msk.msra.mxu1 %vm44_vm0, %v34_v18  ;;  %241 = vmatmul.mubr.msk.f32.vlgmr.msra.gmra.mrb[0].mxu0 %vm40_vm1, %v23_v19 }
   0xc   :  { %244 = vmatmul.mubr.msk.f32.vlgmr.msra.gmra.mrb[0].mxu1 %vm40_vm1, %v23_v19 }
  0x85   :  { %v203_v21 = vpop.permute.xlu0 %202 }
  0x89   :  { %v213_v36 = vpop.permute.xlu0 %212 }
  0xde   :  { %v123_v25 = vpop.f32.mrb[0].mxu0 }
  0xdf   :  { %v124_v27 = vadd.f32 %v123_v25, %v36_v22  ;;  %v194_v28 = vpop.f32.mrb[0].mxu1  ;;  %v125_v29 = vpop.f32.mrb[1].mxu0 }
  0xe0   :  { %v195_v30 = vadd.f32 %v194_v28, %v38_v23  ;;  %v126_v31 = vadd.f32 %v125_v29, %v37_v24  ;;  %v196_v32 = vpop.f32.mrb[1].mxu1 }
  0xe1   :  { %v205_v33 = vmul.f32 %v203_v21, %v124_v27  ;;  %v197_v34 = vadd.f32 %v196_v32, %v39_v26 }
  0xe2   :  { %v207_v35 = vmul.f32 %v203_v21, %v195_v30  ;;  %v206_v37 = vmul.f32 %v203_v21, %v126_v31 }
  0xe3   :  { %v215_v38 = vadd.f32 %v213_v36, %v205_v33  ;;  %v208_v39 = vmul.f32 %v203_v21, %v197_v34 }
  0xe4   :  { %v217_v41 = vadd.f32 %v213_v36, %v207_v35  ;;  %v216_v42 = vadd.f32 %v213_v36, %v206_v37 }
  0xe5   :  { %v219_v44 = vmax.f32 %v215_v38, 0.0  ;;  %v218_v46 = vadd.f32 %v213_v36, %v208_v39 }
  0xe6   :  { %v221_v47 = vmax.f32 %v217_v41, 0.0  ;;  %v220_v48 = vmax.f32 %v216_v42, 0.0 }
  0xe7   :  { %v227_v50 = vadd.f32 %v223_v40, %v219_v44  ;;  %v222_v51 = vmax.f32 %v218_v46, 0.0 }
  0xe8   :  { %v229_v52 = vadd.f32 %v225_v43, %v221_v47  ;;  %v228_v53 = vadd.f32 %v224_v45, %v220_v48 }
  0xe9   :  { %231 = vst [vmem:[%s384_s6] sm:$0x3f] %v227_v50  ;;  %v230_v54 = vadd.f32 %v226_v49, %v222_v51 }
  0xea   :  { %233 = vst [vmem:[%s384_s6 + $0x10] sm:$0x3f] %v229_v52  ;;  %232 = vst [vmem:[%s384_s6 + $0x8] sm:$0x3f] %v228_v53 }
  0xeb   :  { %234 = vst [vmem:[%s384_s6 + $0x18] sm:$0x3f] %v230_v54 }

</bundles_post_ra>
